<compile_context>
chip_gen: v7x
topology: tpu7x:2x2x1
jax: 0.10.0
libtpu: 0.0.40
codegen_flags: <defaults>
</compile_context>

<pallas_src>
import math

import jax
import jax.numpy as jnp
from jax.experimental import pallas as pl
from jax.experimental.pallas import tpu as pltpu


def _round_up(x, m):
    return ((x + m - 1) // m) * m


# --------------------------------------------------------------------------- #
# Kernel
# --------------------------------------------------------------------------- #
def _mslstm_kernel(x_ref, h_ref, c_ref, C_ref,
                   wx_ref, wh_ref, bg_ref,
                   wmc_ref, wmC_ref, bm_ref,
                   new_h_ref, new_c_ref, new_C_ref):
    # x_ref: (TB, in_dim) f32 ; h/c/C_ref: (TB, Hp) f32
    # wx_ref: (in_dim, 5*Hp) bf16 ; wh_ref: (Hp, 5*Hp) bf16 ; bg_ref: (1, 5*Hp) f32
    # wmc_ref, wmC_ref: (Hp, Hp) bf16 ; bm_ref: (1, Hp) f32
    Hp = h_ref.shape[1]
    mm_dtype = wx_ref.dtype

    x = x_ref[...].astype(mm_dtype)
    h = h_ref[...].astype(mm_dtype)

    # Fused gate pre-activations == concat([x, h]) @ W_gates + b, with f32 acc.
    gates = (jnp.dot(x, wx_ref[...], preferred_element_type=jnp.float32)
             + jnp.dot(h, wh_ref[...], preferred_element_type=jnp.float32)
             + bg_ref[...])                                        # (TB, 5*Hp) f32

    def _sigmoid(v):
        # Single-EUP-op sigmoid: sigma(v) = 0.5 * (tanh(v/2) + 1)  (exact).
        return 0.5 * (jnp.tanh(0.5 * v) + 1.0)

    # 128-lane-aligned gate slabs (Hp is a multiple of 128).
    i = _sigmoid(gates[:, 0 * Hp:1 * Hp])
    f = _sigmoid(gates[:, 1 * Hp:2 * Hp])
    o = _sigmoid(gates[:, 2 * Hp:3 * Hp])
    g1 = jnp.tanh(gates[:, 3 * Hp:4 * Hp])
    g2 = jnp.tanh(gates[:, 4 * Hp:5 * Hp])

    new_c = f * c_ref[...] + i * g1                                # (TB, Hp) f32
    new_C = f * C_ref[...] + i * g2                                # (TB, Hp) f32

    # mlp(concat([new_c, new_C])) without the concat: split-weight matmuls.
    pre = (jnp.dot(new_c.astype(mm_dtype), wmc_ref[...],
                   preferred_element_type=jnp.float32)
           + jnp.dot(new_C.astype(mm_dtype), wmC_ref[...],
                     preferred_element_type=jnp.float32)
           + bm_ref[...])                                          # (TB, Hp) f32
    new_h = o * jnp.tanh(pre)

    new_h_ref[...] = new_h
    new_c_ref[...] = new_c
    new_C_ref[...] = new_C


# --------------------------------------------------------------------------- #
# One-time weight prepacking (hoisted out of the per-step forward).
# --------------------------------------------------------------------------- #
def prepack_params(params, input_dim, h_dim, *, matmul_dtype=jnp.bfloat16):
    """Pack the five gate linears + mlp into kernel-ready, 128-lane-padded,
    (optionally) bf16 weights.  Call once; reuse across timesteps."""
    Hp = _round_up(h_dim, 128)
    pad_out = Hp - h_dim

    def pad_gate_w(w):                      # (in+H, H) -> (in+H, Hp)
        return jnp.pad(w, ((0, 0), (0, pad_out)))

    w_all = jnp.concatenate(
        [pad_gate_w(params[k]) for k in ("w_i", "w_f", "w_o", "w_g1", "w_g2")],
        axis=1)                                               # (in+H, 5*Hp)
    wx = w_all[:input_dim].astype(matmul_dtype)               # (in, 5*Hp)
    wh = jnp.pad(w_all[input_dim:], ((0, pad_out), (0, 0))
                 ).astype(matmul_dtype)                       # (Hp, 5*Hp)

    bg = jnp.concatenate(
        [jnp.pad(params[k], (0, pad_out)) for k in ("b_i", "b_f", "b_o", "b_g1", "b_g2")]
    ).reshape(1, 5 * Hp).astype(jnp.float32)                  # (1, 5*Hp)

    wm = params["w_mlp"]                                      # (2H, H)
    wmc = jnp.pad(wm[:h_dim], ((0, pad_out), (0, pad_out))).astype(matmul_dtype)
    wmC = jnp.pad(wm[h_dim:], ((0, pad_out), (0, pad_out))).astype(matmul_dtype)
    bm = jnp.pad(params["b_mlp"], (0, pad_out)).reshape(1, Hp).astype(jnp.float32)

    return dict(wx=wx, wh=wh, bg=bg, wmc=wmc, wmC=wmC, bm=bm,
                input_dim=input_dim, h_dim=h_dim, h_pad=Hp)


# --------------------------------------------------------------------------- #
# Forward wrapper
# --------------------------------------------------------------------------- #
def mslstm_forward(x, state, packed, *, block_b=256):
    """x: (B, input_dim) f32; state = (h, c, C), each (B, h_dim) f32.
    `packed` comes from prepack_params().  Returns (new_h, new_c, new_C)."""
    h, c, C = state
    B, in_dim = x.shape
    H = packed["h_dim"]
    Hp = packed["h_pad"]
    assert in_dim == packed["input_dim"]
    assert h.shape == (B, H) and c.shape == (B, H) and C.shape == (B, H)

    # --- batch tile: multiple of 128 for MXU M-fill; >=2 grid steps when the
    # padded batch permits (feeds both v7x TensorCores). v5e: pass block_b=128.
    Bp128 = _round_up(B, 128)
    tb = min(_round_up(block_b, 128), Bp128)
    if Bp128 >= 2 * 128 and tb > Bp128 // 2:
        tb = max(128, ((Bp128 // 2) // 128) * 128)
    Bp = _round_up(B, tb)

    # --- pad batch / feature dims only when needed (no-op for aligned shapes).
    if Bp != B:
        x = jnp.pad(x, ((0, Bp - B), (0, 0)))

    def pad_state(s):
        if Bp != B or Hp != H:
            return jnp.pad(s, ((0, Bp - B), (0, Hp - H)))
        return s

    h, c, C = pad_state(h), pad_state(c), pad_state(C)

    grid = (Bp // tb,)

    # --- VMEM budget: resident weights + double-buffered activation tiles.
    def _nbytes(a):
        return int(a.size) * a.dtype.itemsize

    weight_bytes = sum(_nbytes(packed[k]) for k in ("wx", "wh", "bg", "wmc", "wmC", "bm"))
    act_tile_bytes = 4 * (tb * in_dim + 6 * tb * Hp)      # x + h/c/C + 3 outputs (f32)
    gates_tmp_bytes = 4 * tb * 5 * Hp                     # in-kernel temporaries
    vmem_need = 2 * weight_bytes + 2 * act_tile_bytes + 2 * gates_tmp_bytes
    try:
        phys_vmem = int(getattr(pltpu.get_tpu_info(), "vmem_capacity_bytes",
                                64 * 1024 * 1024))
    except Exception:
        phys_vmem = 64 * 1024 * 1024                      # v7x per-TC floor
    vmem_cap = min(int(phys_vmem * 0.8), 100 * 1024 * 1024)
    vmem_limit = int(min(max(vmem_need, 32 * 1024 * 1024), vmem_cap))

    row_spec_x = pl.BlockSpec((tb, in_dim), lambda b: (b, 0))
    row_spec_h = pl.BlockSpec((tb, Hp), lambda b: (b, 0))

    new_h, new_c, new_C = pl.pallas_call(
        _mslstm_kernel,
        out_shape=(
            jax.ShapeDtypeStruct((Bp, Hp), jnp.float32),
            jax.ShapeDtypeStruct((Bp, Hp), jnp.float32),
            jax.ShapeDtypeStruct((Bp, Hp), jnp.float32),
        ),
        grid_spec=pltpu.PrefetchScalarGridSpec(
            num_scalar_prefetch=0,
            grid=grid,
            in_specs=[
                row_spec_x,                                         # x block
                row_spec_h,                                         # h block
                row_spec_h,                                         # c block
                row_spec_h,                                         # C block
                pl.BlockSpec((in_dim, 5 * Hp), lambda b: (0, 0)),   # wx (resident, bf16)
                pl.BlockSpec((Hp, 5 * Hp), lambda b: (0, 0)),       # wh (resident, bf16)
                pl.BlockSpec((1, 5 * Hp), lambda b: (0, 0)),        # gate bias (f32)
                pl.BlockSpec((Hp, Hp), lambda b: (0, 0)),           # mlp weight (c half)
                pl.BlockSpec((Hp, Hp), lambda b: (0, 0)),           # mlp weight (C half)
                pl.BlockSpec((1, Hp), lambda b: (0, 0)),            # mlp bias (f32)
            ],
            out_specs=[
                pl.BlockSpec((tb, Hp), lambda b: (b, 0)),
                pl.BlockSpec((tb, Hp), lambda b: (b, 0)),
                pl.BlockSpec((tb, Hp), lambda b: (b, 0)),
            ],
        ),
        compiler_params=pltpu.CompilerParams(
            dimension_semantics=("parallel",),
            vmem_limit_bytes=vmem_limit),
    )(x, h, c, C,
      packed["wx"], packed["wh"], packed["bg"],
      packed["wmc"], packed["wmC"], packed["bm"])

    if Bp != B or Hp != H:
        new_h = new_h[:B, :H]
        new_c = new_c[:B, :H]
        new_C = new_C[:B, :H]
    return new_h, new_c, new_C


# --------------------------------------------------------------------------- #
# Parameter init + pure-JAX reference (PyTorch-faithful)
# --------------------------------------------------------------------------- #
def init_params(key, input_dim, h_dim):
    """Uniform init mirroring MSLSTMCell.reset_parameters (gates: +/-1/sqrt(h_dim));
    mlp uses nn.Linear default (+/-1/sqrt(2*h_dim)) since it is created after
    reset_parameters in the PyTorch module."""
    ks = jax.random.split(key, 12)
    stdv = 1.0 / math.sqrt(h_dim)

    def gate(kw, kb):
        w = jax.random.uniform(kw, (input_dim + h_dim, h_dim), jnp.float32, -stdv, stdv)
        b = jax.random.uniform(kb, (h_dim,), jnp.float32, -stdv, stdv)
        return w, b

    w_i, b_i = gate(ks[0], ks[1])
    w_f, b_f = gate(ks[2], ks[3])
    w_o, b_o = gate(ks[4], ks[5])
    w_g1, b_g1 = gate(ks[6], ks[7])
    w_g2, b_g2 = gate(ks[8], ks[9])

    mlp_bound = 1.0 / math.sqrt(2 * h_dim)
    w_mlp = jax.random.uniform(ks[10], (2 * h_dim, h_dim), jnp.float32, -mlp_bound, mlp_bound)
    b_mlp = jax.random.uniform(ks[11], (h_dim,), jnp.float32, -mlp_bound, mlp_bound)

    return dict(w_i=w_i, b_i=b_i, w_f=w_f, b_f=b_f, w_o=w_o, b_o=b_o,
                w_g1=w_g1, b_g1=b_g1, w_g2=w_g2, b_g2=b_g2,
                w_mlp=w_mlp, b_mlp=b_mlp)


def mslstm_reference(x, state, p):
    """Pure-JAX f32 reference matching the PyTorch forward exactly."""
    h, c, C = state
    xh = jnp.concatenate([x, h], axis=1)
    i = jax.nn.sigmoid(xh @ p["w_i"] + p["b_i"])
    f = jax.nn.sigmoid(xh @ p["w_f"] + p["b_f"])
    o = jax.nn.sigmoid(xh @ p["w_o"] + p["b_o"])
    g1 = jnp.tanh(xh @ p["w_g1"] + p["b_g1"])
    g2 = jnp.tanh(xh @ p["w_g2"] + p["b_g2"])
    new_c = f * c + i * g1
    new_C = f * C + i * g2
    new_h = o * jnp.tanh(jnp.concatenate([new_c, new_C], axis=1) @ p["w_mlp"] + p["b_mlp"])
    return new_h, new_c, new_C


# --------------------------------------------------------------------------- #
# Test
# --------------------------------------------------------------------------- #
if __name__ == "__main__":
    B, IN, H = 16, 32, 32  # batch, input_dim, h_dim (small test shapes)

    key = jax.random.PRNGKey(0)
    k_x, k_h, k_c, k_C, k_p = jax.random.split(key, 5)
    x = jax.random.normal(k_x, (B, IN), jnp.float32)
    h = jax.random.normal(k_h, (B, H), jnp.float32)
    c = jax.random.normal(k_c, (B, H), jnp.float32)
    Cm = jax.random.normal(k_C, (B, H), jnp.float32)
    params = init_params(k_p, IN, H)

    # One-time prepack (bf16 MXU operands, 128-lane-padded gate slabs).
    packed = prepack_params(params, IN, H)

    new_h, new_c, new_C = mslstm_forward(x, (h, c, Cm), packed, block_b=256)
    new_h = jax.block_until_ready(new_h)
    new_c = jax.block_until_ready(new_c)
    new_C = jax.block_until_ready(new_C)

    # bf16 matmul operands -> loosened parity vs. the f32 reference
    # (accumulation and nonlinearities remain f32).
    ref_h, ref_c, ref_C = mslstm_reference(x, (h, c, Cm), params)
    assert jnp.allclose(new_h, ref_h, atol=6e-2, rtol=6e-2), "new_h mismatch"
    assert jnp.allclose(new_c, ref_c, atol=6e-2, rtol=6e-2), "new_c mismatch"
    assert jnp.allclose(new_C, ref_C, atol=6e-2, rtol=6e-2), "new_C mismatch"

    print("KERNEL_OK")
</pallas_src>

<mosaic_0001>
module attributes {stable_mosaic.version = 11 : i64} {
  func.func @_mslstm_kernel(%arg0: i32, %arg1: memref<128x32xf32, #tpu.memory_space<vmem>>, %arg2: memref<128x128xf32, #tpu.memory_space<vmem>>, %arg3: memref<128x128xf32, #tpu.memory_space<vmem>>, %arg4: memref<128x128xf32, #tpu.memory_space<vmem>>, %arg5: memref<32x640xbf16, #tpu.memory_space<vmem>>, %arg6: memref<128x640xbf16, #tpu.memory_space<vmem>>, %arg7: memref<1x640xf32, #tpu.memory_space<vmem>>, %arg8: memref<128x128xbf16, #tpu.memory_space<vmem>>, %arg9: memref<128x128xbf16, #tpu.memory_space<vmem>>, %arg10: memref<1x128xf32, #tpu.memory_space<vmem>>, %arg11: memref<128x128xf32, #tpu.memory_space<vmem>>, %arg12: memref<128x128xf32, #tpu.memory_space<vmem>>, %arg13: memref<128x128xf32, #tpu.memory_space<vmem>>) attributes {dimension_semantics = [#tpu.dimension_semantics<parallel>], iteration_bounds = array<i64: 1>, scalar_prefetch = 0 : i64, scratch_operands = 0 : i64, tpu.core_type = #tpu.core_type<tc>, window_params = [{transform_indices = @transform_0, window_bounds = array<i64: 128, 32>}, {transform_indices = @transform_1, window_bounds = array<i64: 128, 128>}, {transform_indices = @transform_2, window_bounds = array<i64: 128, 128>}, {transform_indices = @transform_3, window_bounds = array<i64: 128, 128>}, {pipeline_mode = #tpu.pipeline_mode<synchronous>, transform_indices = @transform_4, window_bounds = array<i64: 32, 640>}, {pipeline_mode = #tpu.pipeline_mode<synchronous>, transform_indices = @transform_5, window_bounds = array<i64: 128, 640>}, {pipeline_mode = #tpu.pipeline_mode<synchronous>, transform_indices = @transform_6, window_bounds = array<i64: 1, 640>}, {pipeline_mode = #tpu.pipeline_mode<synchronous>, transform_indices = @transform_7, window_bounds = array<i64: 128, 128>}, {pipeline_mode = #tpu.pipeline_mode<synchronous>, transform_indices = @transform_8, window_bounds = array<i64: 128, 128>}, {pipeline_mode = #tpu.pipeline_mode<synchronous>, transform_indices = @transform_9, window_bounds = array<i64: 1, 128>}, {transform_indices = @transform_10, window_bounds = array<i64: 128, 128>}, {transform_indices = @transform_11, window_bounds = array<i64: 128, 128>}, {transform_indices = @transform_12, window_bounds = array<i64: 128, 128>}]} {
    %c0 = arith.constant 0 : index
    %c0_0 = arith.constant 0 : index
    %0 = vector.load %arg1[%c0, %c0_0] : memref<128x32xf32, #tpu.memory_space<vmem>>, vector<128x32xf32>
    %1 = arith.truncf %0 : vector<128x32xf32> to vector<128x32xbf16>
    %c0_1 = arith.constant 0 : index
    %c0_2 = arith.constant 0 : index
    %2 = vector.load %arg2[%c0_1, %c0_2] : memref<128x128xf32, #tpu.memory_space<vmem>>, vector<128x128xf32>
    %3 = arith.truncf %2 : vector<128x128xf32> to vector<128x128xbf16>
    %c0_3 = arith.constant 0 : index
    %c0_4 = arith.constant 0 : index
    %4 = vector.load %arg5[%c0_3, %c0_4] : memref<32x640xbf16, #tpu.memory_space<vmem>>, vector<32x640xbf16>
    %cst = arith.constant dense<0.000000e+00> : vector<128x640xf32>
    %5 = tpu.matmul %1, %4, %cst {dimension_numbers = #tpu.dot_dimension_numbers<[1], [0], [0], [1], [0, 0, 1, 1], [], []>} : vector<128x32xbf16>, vector<32x640xbf16>, vector<128x640xf32> -> vector<128x640xf32>
    %c0_5 = arith.constant 0 : index
    %c0_6 = arith.constant 0 : index
    %6 = vector.load %arg6[%c0_5, %c0_6] : memref<128x640xbf16, #tpu.memory_space<vmem>>, vector<128x640xbf16>
    %cst_7 = arith.constant dense<0.000000e+00> : vector<128x640xf32>
    %7 = tpu.matmul %3, %6, %cst_7 {dimension_numbers = #tpu.dot_dimension_numbers<[1], [0], [0], [1], [0, 0, 1, 1], [], []>} : vector<128x128xbf16>, vector<128x640xbf16>, vector<128x640xf32> -> vector<128x640xf32>
    %8 = arith.addf %5, %7 : vector<128x640xf32>
    %c0_8 = arith.constant 0 : index
    %c0_9 = arith.constant 0 : index
    %9 = vector.load %arg7[%c0_8, %c0_9] : memref<1x640xf32, #tpu.memory_space<vmem>>, vector<1x640xf32>
    %10 = vector.broadcast %9 : vector<1x640xf32> to vector<128x640xf32>
    %11 = arith.addf %8, %10 : vector<128x640xf32>
    %12 = vector.extract_strided_slice %11 {offsets = [0, 0], sizes = [128, 128], strides = [1, 1]} : vector<128x640xf32> to vector<128x128xf32>
    %cst_10 = arith.constant 5.000000e-01 : f32
    %13 = vector.broadcast %cst_10 : f32 to vector<128x128xf32>
    %14 = arith.mulf %13, %12 : vector<128x128xf32>
    %15 = math.tanh %14 : vector<128x128xf32>
    %cst_11 = arith.constant 1.000000e+00 : f32
    %16 = vector.broadcast %cst_11 : f32 to vector<128x128xf32>
    %17 = arith.addf %15, %16 : vector<128x128xf32>
    %cst_12 = arith.constant 5.000000e-01 : f32
    %18 = vector.broadcast %cst_12 : f32 to vector<128x128xf32>
    %19 = arith.mulf %18, %17 : vector<128x128xf32>
    %20 = vector.extract_strided_slice %11 {offsets = [0, 128], sizes = [128, 128], strides = [1, 1]} : vector<128x640xf32> to vector<128x128xf32>
    %cst_13 = arith.constant 5.000000e-01 : f32
    %21 = vector.broadcast %cst_13 : f32 to vector<128x128xf32>
    %22 = arith.mulf %21, %20 : vector<128x128xf32>
    %23 = math.tanh %22 : vector<128x128xf32>
    %cst_14 = arith.constant 1.000000e+00 : f32
    %24 = vector.broadcast %cst_14 : f32 to vector<128x128xf32>
    %25 = arith.addf %23, %24 : vector<128x128xf32>
    %cst_15 = arith.constant 5.000000e-01 : f32
    %26 = vector.broadcast %cst_15 : f32 to vector<128x128xf32>
    %27 = arith.mulf %26, %25 : vector<128x128xf32>
    %28 = vector.extract_strided_slice %11 {offsets = [0, 256], sizes = [128, 128], strides = [1, 1]} : vector<128x640xf32> to vector<128x128xf32>
    %cst_16 = arith.constant 5.000000e-01 : f32
    %29 = vector.broadcast %cst_16 : f32 to vector<128x128xf32>
    %30 = arith.mulf %29, %28 : vector<128x128xf32>
    %31 = math.tanh %30 : vector<128x128xf32>
    %cst_17 = arith.constant 1.000000e+00 : f32
    %32 = vector.broadcast %cst_17 : f32 to vector<128x128xf32>
    %33 = arith.addf %31, %32 : vector<128x128xf32>
    %cst_18 = arith.constant 5.000000e-01 : f32
    %34 = vector.broadcast %cst_18 : f32 to vector<128x128xf32>
    %35 = arith.mulf %34, %33 : vector<128x128xf32>
    %36 = vector.extract_strided_slice %11 {offsets = [0, 384], sizes = [128, 128], strides = [1, 1]} : vector<128x640xf32> to vector<128x128xf32>
    %37 = math.tanh %36 : vector<128x128xf32>
    %38 = vector.extract_strided_slice %11 {offsets = [0, 512], sizes = [128, 128], strides = [1, 1]} : vector<128x640xf32> to vector<128x128xf32>
    %39 = math.tanh %38 : vector<128x128xf32>
    %c0_19 = arith.constant 0 : index
    %c0_20 = arith.constant 0 : index
    %40 = vector.load %arg3[%c0_19, %c0_20] : memref<128x128xf32, #tpu.memory_space<vmem>>, vector<128x128xf32>
    %41 = arith.mulf %27, %40 : vector<128x128xf32>
    %42 = arith.mulf %19, %37 : vector<128x128xf32>
    %43 = arith.addf %41, %42 : vector<128x128xf32>
    %c0_21 = arith.constant 0 : index
    %c0_22 = arith.constant 0 : index
    %44 = vector.load %arg4[%c0_21, %c0_22] : memref<128x128xf32, #tpu.memory_space<vmem>>, vector<128x128xf32>
    %45 = arith.mulf %27, %44 : vector<128x128xf32>
    %46 = arith.mulf %19, %39 : vector<128x128xf32>
    %47 = arith.addf %45, %46 : vector<128x128xf32>
    %48 = arith.truncf %43 : vector<128x128xf32> to vector<128x128xbf16>
    %c0_23 = arith.constant 0 : index
    %c0_24 = arith.constant 0 : index
    %49 = vector.load %arg8[%c0_23, %c0_24] : memref<128x128xbf16, #tpu.memory_space<vmem>>, vector<128x128xbf16>
    %cst_25 = arith.constant dense<0.000000e+00> : vector<128x128xf32>
    %50 = tpu.matmul %48, %49, %cst_25 {dimension_numbers = #tpu.dot_dimension_numbers<[1], [0], [0], [1], [0, 0, 1, 1], [], []>} : vector<128x128xbf16>, vector<128x128xbf16>, vector<128x128xf32> -> vector<128x128xf32>
    %51 = arith.truncf %47 : vector<128x128xf32> to vector<128x128xbf16>
    %c0_26 = arith.constant 0 : index
    %c0_27 = arith.constant 0 : index
    %52 = vector.load %arg9[%c0_26, %c0_27] : memref<128x128xbf16, #tpu.memory_space<vmem>>, vector<128x128xbf16>
    %cst_28 = arith.constant dense<0.000000e+00> : vector<128x128xf32>
    %53 = tpu.matmul %51, %52, %cst_28 {dimension_numbers = #tpu.dot_dimension_numbers<[1], [0], [0], [1], [0, 0, 1, 1], [], []>} : vector<128x128xbf16>, vector<128x128xbf16>, vector<128x128xf32> -> vector<128x128xf32>
    %54 = arith.addf %50, %53 : vector<128x128xf32>
    %c0_29 = arith.constant 0 : index
    %c0_30 = arith.constant 0 : index
    %55 = vector.load %arg10[%c0_29, %c0_30] : memref<1x128xf32, #tpu.memory_space<vmem>>, vector<1x128xf32>
    %56 = vector.broadcast %55 : vector<1x128xf32> to vector<128x128xf32>
    %57 = arith.addf %54, %56 : vector<128x128xf32>
    %58 = math.tanh %57 : vector<128x128xf32>
    %59 = arith.mulf %35, %58 : vector<128x128xf32>
    %c0_31 = arith.constant 0 : index
    %c0_32 = arith.constant 0 : index
    %60 = vector.load %arg11[%c0_31, %c0_32] : memref<128x128xf32, #tpu.memory_space<vmem>>, vector<128x128xf32>
    tpu.vector_store %arg11[%c0_31, %c0_32], %59 {strides = array<i32>} : memref<128x128xf32, #tpu.memory_space<vmem>>, vector<128x128xf32>,
    %c0_33 = arith.constant 0 : index
    %c0_34 = arith.constant 0 : index
    %61 = vector.load %arg12[%c0_33, %c0_34] : memref<128x128xf32, #tpu.memory_space<vmem>>, vector<128x128xf32>
    tpu.vector_store %arg12[%c0_33, %c0_34], %43 {strides = array<i32>} : memref<128x128xf32, #tpu.memory_space<vmem>>, vector<128x128xf32>,
    %c0_35 = arith.constant 0 : index
    %c0_36 = arith.constant 0 : index
    %62 = vector.load %arg13[%c0_35, %c0_36] : memref<128x128xf32, #tpu.memory_space<vmem>>, vector<128x128xf32>
    tpu.vector_store %arg13[%c0_35, %c0_36], %47 {strides = array<i32>} : memref<128x128xf32, #tpu.memory_space<vmem>>, vector<128x128xf32>,
    return
  }
  func.func @transform_0(%arg0: i32) -> (i32, i32) {
    %c0_i32 = arith.constant 0 : i32
    %c0_i32_0 = arith.constant 0 : i32
    return %arg0, %c0_i32 : i32, i32
  }
  func.func @transform_1(%arg0: i32) -> (i32, i32) {
    %c0_i32 = arith.constant 0 : i32
    %c0_i32_0 = arith.constant 0 : i32
    return %arg0, %c0_i32 : i32, i32
  }
  func.func @transform_2(%arg0: i32) -> (i32, i32) {
    %c0_i32 = arith.constant 0 : i32
    %c0_i32_0 = arith.constant 0 : i32
    return %arg0, %c0_i32 : i32, i32
  }
  func.func @transform_3(%arg0: i32) -> (i32, i32) {
    %c0_i32 = arith.constant 0 : i32
    %c0_i32_0 = arith.constant 0 : i32
    return %arg0, %c0_i32 : i32, i32
  }
  func.func @transform_4(%arg0: i32) -> (i32, i32) {
    %c0_i32 = arith.constant 0 : i32
    %c0_i32_0 = arith.constant 0 : i32
    %c0_i32_1 = arith.constant 0 : i32
    return %c0_i32, %c0_i32_0 : i32, i32
  }
  func.func @transform_5(%arg0: i32) -> (i32, i32) {
    %c0_i32 = arith.constant 0 : i32
    %c0_i32_0 = arith.constant 0 : i32
    %c0_i32_1 = arith.constant 0 : i32
    return %c0_i32, %c0_i32_0 : i32, i32
  }
  func.func @transform_6(%arg0: i32) -> (i32, i32) {
    %c0_i32 = arith.constant 0 : i32
    %c0_i32_0 = arith.constant 0 : i32
    %c0_i32_1 = arith.constant 0 : i32
    return %c0_i32, %c0_i32_0 : i32, i32
  }
  func.func @transform_7(%arg0: i32) -> (i32, i32) {
    %c0_i32 = arith.constant 0 : i32
    %c0_i32_0 = arith.constant 0 : i32
    %c0_i32_1 = arith.constant 0 : i32
    return %c0_i32, %c0_i32_0 : i32, i32
  }
  func.func @transform_8(%arg0: i32) -> (i32, i32) {
    %c0_i32 = arith.constant 0 : i32
    %c0_i32_0 = arith.constant 0 : i32
    %c0_i32_1 = arith.constant 0 : i32
    return %c0_i32, %c0_i32_0 : i32, i32
  }
  func.func @transform_9(%arg0: i32) -> (i32, i32) {
    %c0_i32 = arith.constant 0 : i32
    %c0_i32_0 = arith.constant 0 : i32
    %c0_i32_1 = arith.constant 0 : i32
    return %c0_i32, %c0_i32_0 : i32, i32
  }
  func.func @transform_10(%arg0: i32) -> (i32, i32) {
    %c0_i32 = arith.constant 0 : i32
    %c0_i32_0 = arith.constant 0 : i32
    return %arg0, %c0_i32 : i32, i32
  }
  func.func @transform_11(%arg0: i32) -> (i32, i32) {
    %c0_i32 = arith.constant 0 : i32
    %c0_i32_0 = arith.constant 0 : i32
    return %arg0, %c0_i32 : i32, i32
  }
  func.func @transform_12(%arg0: i32) -> (i32, i32) {
    %c0_i32 = arith.constant 0 : i32
    %c0_i32_0 = arith.constant 0 : i32
    return %arg0, %c0_i32 : i32, i32
  }
}

</mosaic_0001>

<bundles_post_ra>
// kernel: tpu_custom_call.1
= control target key start
LH: loop header
LB: loop body
LE: loop exit
PB: predicated region body
PF: predicated region fallthrough
CT: control target
= control target key end

     0   :  { %18 = vsyncpa [#allocation3], 0  ;;  %s3877_s0 = inlined_call_operand.vmem [shape: f32[128,32], index: 0, kind: input, shape index: {}]   ;;  %s3878_s1 = inlined_call_operand.vmem [shape: f32[128,128], index: 1, kind: input, shape index: {}]   ;;  %s3879_s2 = inlined_call_operand.hbm [shape: f32[128,128], index: 2, kind: input, shape index: {}]   ;;  %s3880_s3 = inlined_call_operand.hbm [shape: f32[128,128], index: 3, kind: input, shape index: {}]   ;;  %s3881_s4 = inlined_call_operand.hbm [shape: bf16[32,640], index: 4, kind: input, shape index: {}]   ;;  %s3882_s5 = inlined_call_operand.hbm [shape: bf16[128,640], index: 5, kind: input, shape index: {}]   ;;  %s3883_s6 = inlined_call_operand.vmem [shape: f32[1,640], index: 6, kind: input, shape index: {}]   ;;  %s3884_s7 = inlined_call_operand.hbm [shape: bf16[128,128], index: 7, kind: input, shape index: {}]   ;;  %s3885_s8 = inlined_call_operand.hbm [shape: bf16[128,128], index: 8, kind: input, shape index: {}]   ;;  %s3886_s9 = inlined_call_operand.vmem [shape: f32[1,128], index: 9, kind: input, shape index: {}]   ;;  %s3887_s10 = inlined_call_operand.hbm [shape: f32[128,128], index: 10, kind: output, shape index: {0}]   ;;  %s3888_s11 = inlined_call_operand.hbm [shape: f32[128,128], index: 11, kind: output, shape index: {1}]   ;;  %s3889_s12 = inlined_call_operand.hbm [shape: f32[128,128], index: 12, kind: output, shape index: {2}]  }
   0x1   :  { %19 = vsyncpa [#allocation6], 0 }
   0x2   :  { %20 = vsyncpa [#allocation9], 0 }
   0x3   :  { %21 = vsyncpa [#allocation12], 0 }
   0x4   :  { %22 = vsyncpa [#allocation4], 0 }
   0x5   :  { %23 = vsyncpa [#allocation15], 0  ;;  %s2979_s21 = smov [#allocation5]   ;;  %s2769_s25 = scalar_lea.hbm %s3880_s3, 2048 }
   0x6   :  { %s45_s22 = sshll.u32 %s2979_s21, 4  ;;  %p2770_p0 = scmp.ne.s32.totalorder %s3880_s3, %s2769_s25  ;;  %s46_s22 = int_to_ptr.vmem [resolvable:$true] %s45_s22 }
   0x7   :  { %p2773_p1 = scmp.lt.u32.totalorder %s2769_s25, %s3880_s3 }
   0x9   :  { %p2775_p2 = pnand %p2773_p1, %p2770_p0 }
   0xb   :  { %2778 = shalt.err (!%p2775_p2)
}
   0xc   :  { %s2779_s30 = scalar_lea.vmem %s46_s22, 2048  ;;  %p2784_p4 = scmp.lt.s32.totalorder %s46_s22, %s46_s22 }
   0xd   :  { %p2780_p3 = scmp.ne.s32.totalorder %s46_s22, %s2779_s30  ;;  %p2785_p5 = scmp.lt.s32.totalorder %s2779_s30, %s2779_s30 }
   0xf   :  { %p2786_p6 = por %p2785_p5, %p2784_p4 }
  0x11   :  { %p2787_p7 = pnand %p2786_p6, %p2780_p3 }
  0x13   :  { %2790 = shalt.err (!%p2787_p7)
}
  0x14   :  { %s2980_s13 = smov 128   ;;  %s2981_s14 = smov 8  }
  0x15   :  { %51 = dma.hbm_to_vmem [thread:$0]  %s3880_s3, 2048, %s46_s22, [#allocation6], %s2980_s13, %s2980_s13, %s2981_s14  }
  0x16   :  { %s2982_s17 = smov [#allocation8]   ;;  %s2983_s19 = smov [#allocation2]  }
  0x17   :  { %s69_s18 = sshll.u32 %s2982_s17, 4  ;;  %s33_s20 = sshll.u32 %s2983_s19, 4  ;;  %s70_s18 = int_to_ptr.vmem [resolvable:$true] %s69_s18  ;;  %s34_s20 = int_to_ptr.vmem [resolvable:$true] %s33_s20 }
  0x18   :  { %s2791_s24 = scalar_lea.hbm %s3882_s5, 5120 }
  0x19   :  { %p2792_p8 = scmp.ne.s32.totalorder %s3882_s5, %s2791_s24  ;;  %p2795_p9 = scmp.lt.u32.totalorder %s2791_s24, %s3882_s5 }
  0x1b   :  { %p2797_p10 = pnand %p2795_p9, %p2792_p8 }
  0x1d   :  { %2800 = shalt.err (!%p2797_p10)
}
  0x1e   :  { %s2801_s3 = scalar_lea.vmem %s70_s18, 5120  ;;  %p2806_p12 = scmp.lt.s32.totalorder %s70_s18, %s70_s18 }
  0x1f   :  { %p2802_p11 = scmp.ne.s32.totalorder %s70_s18, %s2801_s3  ;;  %p2807_p13 = scmp.lt.s32.totalorder %s2801_s3, %s2801_s3 }
  0x21   :  { %p2808_p0 = por %p2807_p13, %p2806_p12 }
  0x23   :  { %p2809_p1 = pnand %p2808_p0, %p2802_p11 }
  0x25   :  { %2812 = shalt.err (!%p2809_p1)
}
  0x26   :  { %s2984_s22 = smov 320   ;;  %s2985_s29 = smov 20  }
  0x27   :  { %75 = dma.hbm_to_vmem [thread:$0]  %s3882_s5, 5120, %s70_s18, [#allocation9], %s2984_s22, %s2984_s22, %s2985_s29  }
  0x28   :  { %s2813_s19 = scalar_lea.hbm %s3879_s2, 2048 }
  0x29   :  { %p2814_p2 = scmp.ne.s32.totalorder %s3879_s2, %s2813_s19  ;;  %p2817_p3 = scmp.lt.u32.totalorder %s2813_s19, %s3879_s2 }
  0x2b   :  { %p2819_p4 = pnand %p2817_p3, %p2814_p2 }
  0x2d   :  { %2822 = shalt.err (!%p2819_p4)
}
  0x2e   :  { %s2823_s26 = scalar_lea.vmem %s34_s20, 2048  ;;  %p2828_p6 = scmp.lt.s32.totalorder %s34_s20, %s34_s20 }
  0x2f   :  { %p2824_p5 = scmp.ne.s32.totalorder %s34_s20, %s2823_s26  ;;  %p2829_p7 = scmp.lt.s32.totalorder %s2823_s26, %s2823_s26 }
  0x31   :  { %p2830_p8 = por %p2829_p7, %p2828_p6 }
  0x33   :  { %p2831_p9 = pnand %p2830_p8, %p2824_p5 }
  0x35   :  { %2834 = shalt.err (!%p2831_p9)
}
  0x36   :  { %39 = dma.hbm_to_vmem [thread:$0]  %s3879_s2, 2048, %s34_s20, [#allocation3], %s2980_s13, %s2980_s13, %s2981_s14  }
  0x37   :  { %s2986_s27 = smov [#allocation7]   ;;  %s2987_s3 = smov [#allocation10]  }
  0x38   :  { %s57_s28 = sshll.u32 %s2986_s27, 4  ;;  %s83_s30 = sshll.u32 %s2987_s3, 4  ;;  %s58_s28 = int_to_ptr.vmem [resolvable:$true] %s57_s28  ;;  %s84_s30 = int_to_ptr.vmem [resolvable:$true] %s83_s30 }
  0x39   :  { %s2835_s17 = scalar_lea.hbm %s3881_s4, 1280 }
  0x3a   :  { %p2836_p10 = scmp.ne.s32.totalorder %s3881_s4, %s2835_s17  ;;  %p2839_p11 = scmp.lt.u32.totalorder %s2835_s17, %s3881_s4 }
  0x3c   :  { %p2841_p12 = pnand %p2839_p11, %p2836_p10 }
  0x3e   :  { %2844 = shalt.err (!%p2841_p12)
}
  0x3f   :  { %s2845_s2 = scalar_lea.vmem %s58_s28, 1280  ;;  %p2850_p0 = scmp.lt.s32.totalorder %s58_s28, %s58_s28 }
  0x40   :  { %p2846_p13 = scmp.ne.s32.totalorder %s58_s28, %s2845_s2  ;;  %p2851_p1 = scmp.lt.s32.totalorder %s2845_s2, %s2845_s2 }
  0x42   :  { %p2852_p2 = por %p2851_p1, %p2850_p0 }
  0x44   :  { %p2853_p3 = pnand %p2852_p2, %p2846_p13 }
  0x46   :  { %2856 = shalt.err (!%p2853_p3)
}
  0x47   :  { %63 = dma.hbm_to_vmem [thread:$0]  %s3881_s4, 1280, %s58_s28, [#allocation6], %s2984_s22, %s2984_s22, %s2985_s29  }
  0x48   :  { %s2857_s18 = scalar_lea.hbm %s3884_s7, 1024 }
  0x49   :  { %p2858_p4 = scmp.ne.s32.totalorder %s3884_s7, %s2857_s18  ;;  %p2861_p5 = scmp.lt.u32.totalorder %s2857_s18, %s3884_s7 }
  0x4b   :  { %p2863_p6 = pnand %p2861_p5, %p2858_p4 }
  0x4d   :  { %2866 = shalt.err (!%p2863_p6)
}
  0x4e   :  { %s2867_s17 = scalar_lea.vmem %s84_s30, 1024  ;;  %p2872_p8 = scmp.lt.s32.totalorder %s84_s30, %s84_s30 }
  0x4f   :  { %p2868_p7 = scmp.ne.s32.totalorder %s84_s30, %s2867_s17  ;;  %p2873_p9 = scmp.lt.s32.totalorder %s2867_s17, %s2867_s17 }
  0x51   :  { %p2874_p10 = por %p2873_p9, %p2872_p8 }
  0x53   :  { %p2875_p11 = pnand %p2874_p10, %p2868_p7 }
  0x55   :  { %2878 = shalt.err (!%p2875_p11)
}
  0x56   :  { %s2988_s4 = smov 64   ;;  %s2989_s22 = smov 4  }
  0x57   :  { %89 = dma.hbm_to_vmem [thread:$0]  %s3884_s7, 1024, %s84_s30, [#allocation9], %s2988_s4, %s2988_s4, %s2989_s22  }
  0x58   :  { %s2990_s19 = smov [#allocation11]   ;;  %s2879_s2 = scalar_lea.hbm %s3885_s8, 1024 }
  0x59   :  { %s95_s21 = sshll.u32 %s2990_s19, 4  ;;  %p2880_p12 = scmp.ne.s32.totalorder %s3885_s8, %s2879_s2  ;;  %s96_s21 = int_to_ptr.vmem [resolvable:$true] %s95_s21 }
  0x5a   :  { %p2883_p13 = scmp.lt.u32.totalorder %s2879_s2, %s3885_s8 }
  0x5c   :  { %p2885_p0 = pnand %p2883_p13, %p2880_p12 }
  0x5e   :  { %2888 = shalt.err (!%p2885_p0)
}
  0x5f   :  { %s2889_s18 = scalar_lea.vmem %s96_s21, 1024  ;;  %p2894_p2 = scmp.lt.s32.totalorder %s96_s21, %s96_s21 }
  0x60   :  { %p2890_p1 = scmp.ne.s32.totalorder %s96_s21, %s2889_s18  ;;  %p2895_p3 = scmp.lt.s32.totalorder %s2889_s18, %s2889_s18 }
  0x62   :  { %p2896_p4 = por %p2895_p3, %p2894_p2 }
  0x64   :  { %p2897_p5 = pnand %p2896_p4, %p2890_p1 }
  0x66   :  { %2900 = shalt.err (!%p2897_p5)
}
  0x67   :  { %101 = dma.hbm_to_vmem [thread:$0]  %s3885_s8, 1024, %s96_s21, [#allocation12], %s2988_s4, %s2988_s4, %s2989_s22  }
  0x68   :  { %2967 = dma.done.wait [#allocation3], 2048  }
  0x69   :  { %2968 = vsyncadd [#allocation3], 4294965248 }
  0x6a   :  { %2969 = dma.done.wait [#allocation6], 3328  }
  0x6b   :  { %2970 = vsyncadd [#allocation6], 4294963968 }
  0x6c   :  { %2971 = dma.done.wait [#allocation9], 6144  }
  0x6d   :  { %2972 = vsyncadd [#allocation9], 4294961152 }
  0x6e   :  { %2973 = dma.done.wait [#allocation12], 1024  }
  0x6f   :  { %2974 = vsyncadd [#allocation12], 4294966272  ;;  %v2991_v0 = vmov 0   ;;  %v2490_v1 = vld [vmem:[#allocation8 + $0x4] ss:$20 sps:$4 sm:$0xff]   ;;  %v147_v26 = vld [vmem:[%s3878_s1] sm:$0xff] }
  0x70   :  { %471 = vmatprep.mubr.bf16.mxu0 %v2991_v0  ;;  %584 = vmatprep.mubr.bf16.mxu1 %v2991_v0  ;;  %v2492_v2 = vld [vmem:[#allocation8] ss:$20 sps:$4 sm:$0xff]   ;;  %v2495_v4 = vld [vmem:[#allocation8 + $0x28] ss:$20 sps:$4 sm:$0xff]   ;;  %v2498_v6 = vld [vmem:[#allocation8 + $0x50] ss:$20 sps:$4 sm:$0xff]  }
  0x71   :  { %439 = vmatprep.subr.bf16.mxu0 %v2490_v1  ;;  %v2493_v3 = vld [vmem:[#allocation8 + $0x2c] ss:$20 sps:$4 sm:$0xff]   ;;  %v2496_v5 = vld [vmem:[#allocation8 + $0x54] ss:$20 sps:$4 sm:$0xff]   ;;  %v2499_v7 = vld [vmem:[#allocation8 + $0x7c] ss:$20 sps:$4 sm:$0xff]  }
  0x72   :  { %440 = vmatpush1.bf16.msra.mxu0 %v2492_v2  ;;  %v2501_v8 = vld [vmem:[#allocation8 + $0x78] ss:$20 sps:$4 sm:$0xff]   ;;  %v2516_v11 = vld [vmem:[#allocation8 + $0x8] ss:$20 sps:$4 sm:$0xff]   ;;  %v2504_v12 = vld [vmem:[#allocation8 + $0xa0] ss:$20 sps:$4 sm:$0xff]  }
  0x73   :  { %441 = vmatprep.subr.bf16.mxu0 %v2493_v3  ;;  %v2514_v9 = vld [vmem:[#allocation8 + $0xc] ss:$20 sps:$4 sm:$0xff]   ;;  %v2502_v10 = vld [vmem:[#allocation8 + $0xa4] ss:$20 sps:$4 sm:$0xff]   ;;  %v2518_v13 = vld [vmem:[#allocation8 + $0x34] ss:$20 sps:$4 sm:$0xff]  }
  0x74   :  { %552 = vmatprep.subr.bf16.mxu1 %v2514_v9  ;;  %v2520_v14 = vld [vmem:[#allocation8 + $0x30] ss:$20 sps:$4 sm:$0xff]   ;;  %v2505_v16 = vld [vmem:[#allocation8 + $0xcc] ss:$20 sps:$4 sm:$0xff]   ;;  %v2507_v17 = vld [vmem:[#allocation8 + $0xc8] ss:$20 sps:$4 sm:$0xff]  }
  0x75   :  { %553 = vmatpush1.bf16.msra.mxu1 %v2516_v11  ;;  %v2521_v15 = vld [vmem:[#allocation8 + $0x5c] ss:$20 sps:$4 sm:$0xff]   ;;  %v2523_v18 = vld [vmem:[#allocation8 + $0x58] ss:$20 sps:$4 sm:$0xff]   ;;  %v2508_v20 = vld [vmem:[#allocation8 + $0xf4] ss:$20 sps:$4 sm:$0xff]  }
  0x76   :  { %442 = vmatpush1.bf16.msra.mxu0 %v2495_v4  ;;  %554 = vmatprep.subr.bf16.mxu1 %v2518_v13  ;;  %v2525_v19 = vld [vmem:[#allocation8 + $0x84] ss:$20 sps:$4 sm:$0xff]   ;;  %v2527_v21 = vld [vmem:[#allocation8 + $0x80] ss:$20 sps:$4 sm:$0xff]   ;;  %v2511_v24 = vld [vmem:[#allocation8 + $0x11c] ss:$20 sps:$4 sm:$0xff]  }
  0x77   :  { %443 = vmatprep.subr.bf16.mxu0 %v2496_v5  ;;  %v2510_v22 = vld [vmem:[#allocation8 + $0xf0] ss:$20 sps:$4 sm:$0xff]   ;;  %v2528_v23 = vld [vmem:[#allocation8 + $0xac] ss:$20 sps:$4 sm:$0xff]   ;;  %v2530_v27 = vld [vmem:[#allocation8 + $0xa8] ss:$20 sps:$4 sm:$0xff]  }
  0x78   :  { %v2513_v25 = vld [vmem:[#allocation8 + $0x118] ss:$20 sps:$4 sm:$0xff]   ;;  %v2532_v29 = vld [vmem:[#allocation8 + $0xd4] ss:$20 sps:$4 sm:$0xff]   ;;  %v2517_v30 = vld [vmem:[#allocation8 + $0x10] ss:$20 sps:$4 sm:$0xff]  }
  0x79   :  { %555 = vmatpush1.bf16.msra.mxu1 %v2520_v14  ;;  %v148_v28 = vld [vmem:[%s3878_s1 + $0x8] sm:$0xff]  ;;  %v2534_v32 = vld [vmem:[#allocation8 + $0xd0] ss:$20 sps:$4 sm:$0xff]   ;;  %v150_v37 = vld [vmem:[%s3878_s1 + $0x18] sm:$0xff]  ;;  %vm814_vm0 = vcmask 261120   ;;  %s2992_s18 = smov [#allocation14]  }
  0x7a   :  { %444 = vmatpush1.bf16.msra.mxu0 %v2498_v6  ;;  %556 = vmatprep.subr.bf16.mxu1 %v2521_v15  ;;  %v3152_v31 = vpack.c.bf16 %v148_v28, %v147_v26  ;;  %v2524_v33 = vld [vmem:[#allocation8 + $0x38] ss:$20 sps:$4 sm:$0xff]   ;;  %v2535_v34 = vld [vmem:[#allocation8 + $0xfc] ss:$20 sps:$4 sm:$0xff]   ;;  %v149_v35 = vld [vmem:[%s3878_s1 + $0x10] sm:$0xff]  ;;  %s2079_s7 = sshll.u32 %s2992_s18, 4  ;;  %s2080_s7 = int_to_ptr.vmem [resolvable:$true] %s2079_s7 }
  0x7b   :  { %445 = vmatprep.subr.bf16.mxu0 %v2499_v7  ;;  %v2537_v36 = vld [vmem:[#allocation8 + $0xf8] ss:$20 sps:$4 sm:$0xff]   ;;  %v2531_v39 = vld [vmem:[#allocation8 + $0x60] ss:$20 sps:$4 sm:$0xff]   ;;  %v3162_v40 = vpack.c.bf16 %v150_v37, %v149_v35  ;;  %v2538_v42 = vld [vmem:[#allocation8 + $0x88] ss:$20 sps:$4 sm:$0xff]   ;;  %p2906_p7 = scmp.lt.s32.totalorder %s2080_s7, %s2080_s7 }
  0x7c   :  { %v2539_v38 = vld [vmem:[#allocation8 + $0x124] ss:$20 sps:$4 sm:$0xff]   ;;  %v2541_v41 = vld [vmem:[#allocation8 + $0x120] ss:$20 sps:$4 sm:$0xff]   ;;  %v2554_v43 = vld [vmem:[#allocation7 + $0xc] ss:$20 sps:$4 sm:$0xff]  }
  0x7d   :  { %557 = vmatpush1.bf16.msra.mxu1 %v2523_v18  ;;  %v2552_v44 = vld [vmem:[#allocation7 + $0x8] ss:$20 sps:$4 sm:$0xff]   ;;  %v151_v45 = vld [vmem:[%s3878_s1 + $0x20] sm:$0xff]  ;;  %v153_v52 = vld [vmem:[%s3878_s1 + $0x30] sm:$0xff]  ;;  %s2901_s30 = scalar_lea.vmem %s2080_s7, 2048 }
  0x7e   :  { %446 = vmatpush1.bf16.msra.mxu0 %v2501_v8  ;;  %558 = vmatprep.subr.bf16.mxu1 %v2525_v19  ;;  %v152_v46 = vld [vmem:[%s3878_s1 + $0x28] sm:$0xff]  ;;  %v2542_v48 = vld [vmem:[#allocation8 + $0xb0] ss:$20 sps:$4 sm:$0xff]   ;;  %v2555_v51 = vld [vmem:[#allocation7 + $0x30] ss:$20 sps:$4 sm:$0xff]   ;;  %p2902_p6 = scmp.ne.s32.totalorder %s2080_s7, %s2901_s30  ;;  %p2907_p8 = scmp.lt.s32.totalorder %s2901_s30, %s2901_s30 }
  0x7f   :  { %447 = vmatprep.subr.bf16.mxu0 %v2502_v10  ;;  %v2557_v47 = vld [vmem:[#allocation7 + $0x34] ss:$20 sps:$4 sm:$0xff]   ;;  %v165_v49 = vpack.c.bf16 %v152_v46, %v151_v45  ;;  %v154_v53 = vld [vmem:[%s3878_s1 + $0x38] sm:$0xff]  ;;  %v2544_v54 = vld [vmem:[#allocation8 + $0x100] ss:$20 sps:$4 sm:$0xff]  }
  0x80   :  { %v2543_v50 = vld [vmem:[#allocation8 + $0xd8] ss:$20 sps:$4 sm:$0xff]   ;;  %v166_v55 = vpack.c.bf16 %v154_v53, %v153_v52  ;;  %v2545_v56 = vld [vmem:[#allocation8 + $0x128] ss:$20 sps:$4 sm:$0xff]   ;;  %v155_v57 = vld [vmem:[%s3878_s1 + $0x40] sm:$0xff]  ;;  %v1164_v52 = vlaneseq  ;;  %p2908_p9 = por %p2907_p8, %p2906_p7 }
  0x81   :  { %559 = vmatpush1.bf16.msra.mxu1 %v2527_v21  ;;  %v156_v58 = vld [vmem:[%s3878_s1 + $0x48] sm:$0xff]  ;;  %v2548_v59 = vld [vmem:[#allocation7 + $0x4] ss:$20 sps:$4 sm:$0xff]   ;;  %v157_v61 = vld [vmem:[%s3878_s1 + $0x50] sm:$0xff] }
  0x82   :  { %448 = vmatpush1.bf16.msra.mxu0 %v2504_v12  ;;  %560 = vmatprep.subr.bf16.mxu1 %v2528_v23  ;;  %v167_v60 = vpack.c.bf16 %v156_v58, %v155_v57  ;;  %v158_v62 = vld [vmem:[%s3878_s1 + $0x58] sm:$0xff]  ;;  %v159_v1 = vld [vmem:[%s3878_s1 + $0x60] sm:$0xff]  ;;  %v160_v2 = vld [vmem:[%s3878_s1 + $0x68] sm:$0xff]  ;;  %v3330_v57 = vshrl.u32 %v1164_v52, 7  ;;  %p2909_p10 = pnand %p2908_p9, %p2902_p6 }
  0x83   :  { %449 = vmatprep.subr.bf16.mxu0 %v2505_v16  ;;  %v168_v63 = vpack.c.bf16 %v158_v62, %v157_v61  ;;  %v169_v3 = vpack.c.bf16 %v160_v2, %v159_v1  ;;  %v161_v4 = vld [vmem:[%s3878_s1 + $0x70] sm:$0xff]  ;;  %v162_v5 = vld [vmem:[%s3878_s1 + $0x78] sm:$0xff]  ;;  %v2551_v8 = vld [vmem:[#allocation7 + $0x2c] ss:$20 sps:$4 sm:$0xff]  }
  0x84   :  { %v170_v6 = vpack.c.bf16 %v162_v5, %v161_v4  ;;  %v2546_v7 = vld [vmem:[#allocation7] ss:$20 sps:$4 sm:$0xff]   ;;  %v2549_v9 = vld [vmem:[#allocation7 + $0x28] ss:$20 sps:$4 sm:$0xff]   ;;  %v2558_v10 = vld [vmem:[#allocation7 + $0x10] ss:$20 sps:$4 sm:$0xff]  }
  0x85   :  { %561 = vmatpush1.bf16.msra.mxu1 %v2530_v27  ;;  %v123_v11 = vld [vmem:[%s3877_s0] sm:$0xff]  ;;  %v124_v12 = vld [vmem:[%s3877_s0 + $0x8] sm:$0xff]  ;;  %v125_v14 = vld [vmem:[%s3877_s0 + $0x10] sm:$0xff]  ;;  %3905 = vst [vmem:[#allocation30_spill] sm:$0xff] %v3330_v57  ;;  %v1166_v61 = vsub.s32 0, %v3330_v57  ;;  %v1170_v2 = vsub.s32 1, %v3330_v57 }
  0x86   :  { %450 = vmatpush1.bf16.msra.mxu0 %v2507_v17  ;;  %562 = vmatprep.subr.bf16.mxu1 %v2532_v29  ;;  %v3225_v13 = vpack.c.bf16 %v124_v12, %v123_v11  ;;  %v126_v15 = vld [vmem:[%s3877_s0 + $0x18] sm:$0xff]  ;;  %v127_v17 = vld [vmem:[%s3877_s0 + $0x20] sm:$0xff]  ;;  %v128_v18 = vld [vmem:[%s3877_s0 + $0x28] sm:$0xff] }
  0x87   :  { %451 = vmatprep.subr.bf16.mxu0 %v2508_v20  ;;  %v140_v16 = vpack.c.bf16 %v126_v15, %v125_v14  ;;  %v141_v19 = vpack.c.bf16 %v128_v18, %v127_v17  ;;  %v129_v20 = vld [vmem:[%s3877_s0 + $0x30] sm:$0xff]  ;;  %v130_v21 = vld [vmem:[%s3877_s0 + $0x38] sm:$0xff]  ;;  %v2562_v37 = vld [vmem:[#allocation11 + $0x10] sm:$0xff]  }
  0x88   :  { %v142_v23 = vpack.c.bf16 %v130_v21, %v129_v20  ;;  %v133_v27 = vld [vmem:[%s3877_s0 + $0x50] sm:$0xff]  ;;  %v134_v28 = vld [vmem:[%s3877_s0 + $0x58] sm:$0xff]  ;;  %v3338_v1 = vld [vmem:[%s3883_s6] sm:$0x1f] }
  0x89   :  { %563 = vmatpush1.bf16.msra.mxu1 %v2534_v32  ;;  %v144_v29 = vpack.c.bf16 %v134_v28, %v133_v27 }
  0x8a   :  { %452 = vmatpush1.bf16.msra.mxu0 %v2510_v22  ;;  %564 = vmatprep.subr.bf16.mxu1 %v2535_v34  ;;  %v2559_v22 = vld [vmem:[#allocation7 + $0x38] ss:$20 sps:$4 sm:$0xff]  }
  0x8b   :  { %453 = vmatprep.subr.bf16.mxu0 %v2511_v24  ;;  %v131_v24 = vld [vmem:[%s3877_s0 + $0x40] sm:$0xff]  ;;  %v138_v34 = vld [vmem:[%s3877_s0 + $0x78] sm:$0xff] }
  0x8d   :  { %565 = vmatpush1.bf16.msra.mxu1 %v2537_v36  ;;  %v2561_v36 = vld [vmem:[#allocation11 + $0x8] sm:$0xff]  }
  0x8e   :  { %454 = vmatpush1.bf16.msra.mxu0 %v2513_v25  ;;  %566 = vmatprep.subr.bf16.mxu1 %v2539_v38  ;;  %v132_v25 = vld [vmem:[%s3877_s0 + $0x48] sm:$0xff] }
  0x8f   :  { %2262 = vmatprep.subr.bf16.mxu0 %v2517_v30  ;;  %v143_v26 = vpack.c.bf16 %v132_v25, %v131_v24  ;;  %v2563_v38 = vld [vmem:[#allocation11 + $0x18] sm:$0xff]  }
  0x91   :  { %472 = vmatmul.mubr.bf16.vlgmr.msra.gmra.mrb[0].mxu0 %v3152_v31  ;;  %567 = vmatpush1.bf16.msra.mxu1 %v2541_v41  ;;  %v2566_v41 = vld [vmem:[#allocation11 + $0x30] sm:$0xff]  }
  0x92   :  { %2263 = vmatpush3.bf16.msra.mxu0 %v2517_v30  ;;  %481 = vmatprep.mubr.bf16.mxu0 %v2991_v0  ;;  %v135_v30 = vld [vmem:[%s3877_s0 + $0x60] sm:$0xff] }
  0x93   :  { %2264 = vmatprep.subr.bf16.mxu0 %v2524_v33  ;;  %952 = vmatprep.subr.bf16.mxu1 %v2554_v43  ;;  %v3311_v43 = vld [vmem:[#allocation10] sm:$0xff]  }
  0x94   :  { %585 = vmatmul.mubr.bf16.vlgmr.msra.gmra.mrb[0].mxu1 %v3152_v31  ;;  %3898 = vst [vmem:[#allocation23_spill] sm:$0xff] %v3311_v43 }
  0x95   :  { %594 = vmatprep.mubr.bf16.mxu1 %v2991_v0  ;;  %953 = vmatpush1.bf16.msra.mxu1 %v2552_v44 }
  0x96   :  { %2265 = vmatpush3.bf16.msra.mxu0 %v2524_v33  ;;  %954 = vmatprep.subr.bf16.mxu1 %v2557_v47  ;;  %v137_v33 = vld [vmem:[%s3877_s0 + $0x70] sm:$0xff] }
  0x97   :  { %2266 = vmatprep.subr.bf16.mxu0 %v2531_v39  ;;  %v146_v35 = vpack.c.bf16 %v138_v34, %v137_v33 }
  0x99   :  { %482 = vmatmul.mubr.bf16.gmra.mrb[4].mxu0 %v3162_v40  ;;  %955 = vmatpush1.bf16.msra.mxu1 %v2555_v51 }
  0x9a   :  { %491 = vmatprep.mubr.bf16.mxu0 %v2991_v0  ;;  %2267 = vmatpush3.bf16.msra.mxu0 %v2531_v39  ;;  %v2564_v39 = vld [vmem:[#allocation11 + $0x20] sm:$0xff]  }
  0x9b   :  { %2268 = vmatprep.subr.bf16.mxu0 %v2538_v42 }
  0x9c   :  { %595 = vmatmul.mubr.bf16.gmra.mrb[4].mxu1 %v3162_v40 }
  0x9d   :  { %604 = vmatprep.mubr.bf16.mxu1 %v2991_v0 }
  0x9e   :  { %2269 = vmatpush3.bf16.msra.mxu0 %v2538_v42  ;;  %v2567_v42 = vld [vmem:[#allocation11 + $0x38] sm:$0xff]  }
  0x9f   :  { %2270 = vmatprep.subr.bf16.mxu0 %v2542_v48 }
  0xa1   :  { %492 = vmatmul.mubr.bf16.gmra.mrb[8].mxu0 %v165_v49 }
  0xa2   :  { %501 = vmatprep.mubr.bf16.mxu0 %v2991_v0  ;;  %2271 = vmatpush3.bf16.msra.mxu0 %v2542_v48 }
  0xa3   :  { %2272 = vmatprep.subr.bf16.mxu0 %v2543_v50 }
  0xa4   :  { %605 = vmatmul.mubr.bf16.gmra.mrb[8].mxu1 %v165_v49 }
  0xa5   :  { %614 = vmatprep.mubr.bf16.mxu1 %v2991_v0 }
  0xa6   :  { %2273 = vmatpush3.bf16.msra.mxu0 %v2543_v50 }
  0xa7   :  { %2274 = vmatprep.subr.bf16.mxu0 %v2544_v54 }
  0xa9   :  { %502 = vmatmul.mubr.bf16.gmra.mrb[12].mxu0 %v166_v55 }
  0xaa   :  { %511 = vmatprep.mubr.bf16.mxu0 %v2991_v0  ;;  %2275 = vmatpush3.bf16.msra.mxu0 %v2544_v54 }
  0xab   :  { %2276 = vmatprep.subr.bf16.mxu0 %v2545_v56 }
  0xac   :  { %615 = vmatmul.mubr.bf16.gmra.mrb[12].mxu1 %v166_v55 }
  0xad   :  { %624 = vmatprep.mubr.bf16.mxu1 %v2991_v0 }
  0xae   :  { %2277 = vmatpush3.bf16.msra.mxu0 %v2545_v56 }
  0xaf   :  { %839 = vmatprep.subr.bf16.mxu0 %v2548_v59 }
  0xb1   :  { %512 = vmatmul.mubr.bf16.gmra.mrb[16].mxu0 %v167_v60 }
  0xb2   :  { %521 = vmatprep.mubr.bf16.mxu0 %v2991_v0 }
  0xb4   :  { %625 = vmatmul.mubr.bf16.gmra.mrb[16].mxu1 %v167_v60 }
  0xb5   :  { %634 = vmatprep.mubr.bf16.mxu1 %v2991_v0 }
  0xb9   :  { %522 = vmatmul.mubr.bf16.gmra.mrb[20].mxu0 %v168_v63 }
  0xba   :  { %531 = vmatprep.mubr.bf16.mxu0 %v2991_v0 }
  0xbc   :  { %635 = vmatmul.mubr.bf16.gmra.mrb[20].mxu1 %v168_v63 }
  0xbd   :  { %644 = vmatprep.mubr.bf16.mxu1 %v2991_v0 }
  0xc1   :  { %532 = vmatmul.mubr.bf16.gmra.mrb[24].mxu0 %v169_v3 }
  0xc2   :  { %541 = vmatprep.mubr.bf16.mxu0 %v2991_v0 }
  0xc4   :  { %645 = vmatmul.mubr.bf16.gmra.mrb[24].mxu1 %v169_v3 }
  0xc5   :  { %654 = vmatprep.mubr.bf16.mxu1 %v2991_v0 }
  0xc9   :  { %542 = vmatmul.mubr.bf16.gmra.mrb[28].mxu0 %v170_v6 }
  0xca   :  { %2278 = vmatprep.mubr.bf16.mxu0 %v3152_v31  ;;  %v136_v31 = vld [vmem:[%s3877_s0 + $0x68] sm:$0xff] }
  0xcb   :  { %v145_v32 = vpack.c.bf16 %v136_v31, %v135_v30 }
  0xcc   :  { %655 = vmatmul.mubr.bf16.gmra.mrb[28].mxu1 %v170_v6 }
  0xcd   :  { %984 = vmatprep.mubr.bf16.mxu1 %v2991_v0 }
  0xd1   :  { %2279 = vmatmul.mubr.bf16.vlgmr.msra.gmra.mrb[32].mxu0 %v3162_v40  ;;  %v2565_v40 = vld [vmem:[#allocation11 + $0x28] sm:$0xff]  }
  0xd2   :  { %840 = vmatpush1.bf16.msra.mxu0 %v2546_v7  ;;  %2282 = vmatprep.mubr.bf16.mxu0 %v165_v49  ;;  %v1178_v7 = vsub.s32 3, %v3330_v57 }
  0xd3   :  { %841 = vmatprep.subr.bf16.mxu0 %v2551_v8  ;;  %v3352_v8 = vrot.slane %v3338_v1, %v1170_v2 }
  0xd4   :  { %2171 = vmatmul.mubr.msk.bf16.vlgmr.msra.gmra.mrb[0].mxu1 %vm814_vm0, %v3225_v13  ;;  %v3357_v14 = vrot.slane %v3338_v1, %v1178_v7 }
  0xd5   :  { %994 = vmatprep.mubr.bf16.mxu1 %v2991_v0 }
  0xd6   :  { %842 = vmatpush1.bf16.msra.mxu0 %v2549_v9 }
  0xd7   :  { %2294 = vmatprep.subr.bf16.mxu0 %v2558_v10 }
  0xd9   :  { %2283 = vmatmul.mubr.bf16.gmra.mrb[36].mxu0 %v166_v55 }
  0xda   :  { %2286 = vmatprep.mubr.bf16.mxu0 %v167_v60 }
  0xdc   :  { %2172 = vmatmul.mubr.msk.bf16.gmra.mrb[4].mxu1 %vm814_vm0, %v140_v16 }
  0xdd   :  { %1004 = vmatprep.mubr.bf16.mxu1 %v2991_v0 }
  0xe1   :  { %2287 = vmatmul.mubr.bf16.gmra.mrb[40].mxu0 %v168_v63 }
  0xe2   :  { %2290 = vmatprep.mubr.bf16.mxu0 %v169_v3 }
  0xe4   :  { %2173 = vmatmul.mubr.msk.bf16.gmra.mrb[8].mxu1 %vm814_vm0, %v141_v19 }
  0xe5   :  { %1014 = vmatprep.mubr.bf16.mxu1 %v2991_v0 }
  0xe9   :  { %2291 = vmatmul.mubr.bf16.gmra.mrb[44].mxu0 %v170_v6  ;;  %v3348_v6 = vrot.slane %v3338_v1, %v1166_v61 }
  0xea   :  { %871 = vmatprep.mubr.bf16.mxu0 %v2991_v0 }
  0xec   :  { %2174 = vmatmul.mubr.msk.bf16.gmra.mrb[12].mxu1 %vm814_vm0, %v142_v23 }
  0xed   :  { %1024 = vmatprep.mubr.bf16.mxu1 %v2991_v0 }
  0xf1   :  { %2163 = vmatmul.mubr.msk.bf16.vlgmr.msra.gmra.mrb[0].mxu0 %vm814_vm0, %v3225_v13 }
  0xf2   :  { %2295 = vmatpush3.bf16.msra.mxu0 %v2558_v10  ;;  %881 = vmatprep.mubr.bf16.mxu0 %v2991_v0 }
  0xf3   :  { %2296 = vmatprep.subr.bf16.mxu0 %v2559_v22 }
  0xf4   :  { %2175 = vmatmul.mubr.msk.bf16.gmra.mrb[16].mxu1 %vm814_vm0, %v143_v26 }
  0xf5   :  { %1034 = vmatprep.mubr.bf16.mxu1 %v2991_v0 }
  0xf6   :  { %2297 = vmatpush3.bf16.msra.mxu0 %v2559_v22 }
  0xf9   :  { %2164 = vmatmul.mubr.msk.bf16.gmra.mrb[4].mxu0 %vm814_vm0, %v140_v16 }
  0xfa   :  { %891 = vmatprep.mubr.bf16.mxu0 %v2991_v0 }
  0xfc   :  { %2176 = vmatmul.mubr.msk.bf16.gmra.mrb[20].mxu1 %vm814_vm0, %v144_v29 }
  0xfd   :  { %1044 = vmatprep.mubr.bf16.mxu1 %v2991_v0 }
 0x101   :  { %2165 = vmatmul.mubr.msk.bf16.gmra.mrb[8].mxu0 %vm814_vm0, %v141_v19 }
 0x102   :  { %901 = vmatprep.mubr.bf16.mxu0 %v2991_v0 }
 0x104   :  { %2177 = vmatmul.mubr.msk.bf16.gmra.mrb[24].mxu1 %vm814_vm0, %v145_v32 }
 0x105   :  { %1054 = vmatprep.mubr.bf16.mxu1 %v2991_v0 }
 0x109   :  { %2166 = vmatmul.mubr.msk.bf16.gmra.mrb[12].mxu0 %vm814_vm0, %v142_v23 }
 0x10a   :  { %911 = vmatprep.mubr.bf16.mxu0 %v2991_v0 }
 0x10c   :  { %2178 = vmatmul.mubr.msk.bf16.gmra.mrb[28].mxu1 %vm814_vm0, %v146_v35 }
 0x111   :  { %2167 = vmatmul.mubr.msk.bf16.gmra.mrb[16].mxu0 %vm814_vm0, %v143_v26 }
 0x112   :  { %921 = vmatprep.mubr.bf16.mxu0 %v2991_v0 }
 0x119   :  { %2168 = vmatmul.mubr.msk.bf16.gmra.mrb[20].mxu0 %vm814_vm0, %v144_v29 }
 0x11a   :  { %931 = vmatprep.mubr.bf16.mxu0 %v2991_v0 }
 0x121   :  { %2169 = vmatmul.mubr.msk.bf16.gmra.mrb[24].mxu0 %vm814_vm0, %v145_v32 }
 0x122   :  { %941 = vmatprep.mubr.bf16.mxu0 %v2991_v0  ;;  %v2560_v0 = vld [vmem:[#allocation11] sm:$0xff]  }
 0x123   :  { %2314 = vmatprep.subr.bf16.mxu1 %v2560_v0 }
 0x124   :  { %2315 = vmatpush3.bf16.msra.mxu1 %v2560_v0 }
 0x125   :  { %2316 = vmatprep.subr.bf16.mxu1 %v2561_v36 }
 0x128   :  { %2317 = vmatpush3.bf16.msra.mxu1 %v2561_v36 }
 0x129   :  { %2170 = vmatmul.mubr.msk.bf16.gmra.mrb[28].mxu0 %vm814_vm0, %v146_v35  ;;  %2318 = vmatprep.subr.bf16.mxu1 %v2562_v37 }
 0x12a   :  { %2298 = vmatprep.mubr.msk.bf16.mxu0 %vm814_vm0, %v3225_v13 }
 0x12c   :  { %2319 = vmatpush3.bf16.msra.mxu1 %v2562_v37 }
 0x12d   :  { %2320 = vmatprep.subr.bf16.mxu1 %v2563_v38 }
 0x130   :  { %2321 = vmatpush3.bf16.msra.mxu1 %v2563_v38 }
 0x131   :  { %2299 = vmatmul.mubr.msk.bf16.vlgmr.msra.gmra.mrb[32].mxu0 %vm814_vm0, %v140_v16  ;;  %2322 = vmatprep.subr.bf16.mxu1 %v2564_v39 }
 0x132   :  { %2302 = vmatprep.mubr.msk.bf16.mxu0 %vm814_vm0, %v141_v19 }
 0x134   :  { %2323 = vmatpush3.bf16.msra.mxu1 %v2564_v39 }
 0x135   :  { %2324 = vmatprep.subr.bf16.mxu1 %v2565_v40 }
 0x138   :  { %2325 = vmatpush3.bf16.msra.mxu1 %v2565_v40 }
 0x139   :  { %2303 = vmatmul.mubr.msk.bf16.gmra.mrb[36].mxu0 %vm814_vm0, %v142_v23  ;;  %2326 = vmatprep.subr.bf16.mxu1 %v2566_v41 }
 0x13a   :  { %2306 = vmatprep.mubr.msk.bf16.mxu0 %vm814_vm0, %v143_v26 }
 0x13c   :  { %2327 = vmatpush3.bf16.msra.mxu1 %v2566_v41 }
 0x13d   :  { %2328 = vmatprep.subr.bf16.mxu1 %v2567_v42 }
 0x140   :  { %2329 = vmatpush3.bf16.msra.mxu1 %v2567_v42 }
 0x141   :  { %2307 = vmatmul.mubr.msk.bf16.gmra.mrb[40].mxu0 %vm814_vm0, %v144_v29  ;;  %2346 = vmatprep.subr.bf16.mxu1 %v3311_v43  ;;  %v1503_v43 = vld [vmem:[#allocation2 + $0x50] sm:$0xff] }
 0x142   :  { %2310 = vmatprep.mubr.msk.bf16.mxu0 %vm814_vm0, %v145_v32 }
 0x149   :  { %2311 = vmatmul.mubr.msk.bf16.gmra.mrb[44].mxu0 %vm814_vm0, %v146_v35 }
 0x1a7   :  { %v3314_v44 = vpop.f32.mrb[0].mxu1 }
 0x1a8   :  { %3899 = vst [vmem:[#allocation24_spill] sm:$0xff] %v3314_v44  ;;  %v988_v45 = vpop.f32.mrb[1].mxu1 }
 0x1a9   :  { %v3316_v46 = vpop.f32.mrb[2].mxu1  ;;  %v1192_v32 = vadd.f32 %v3357_v14, %v988_v45 }
 0x1aa   :  { %3900 = vst [vmem:[#allocation25_spill] sm:$0xff] %v3316_v46  ;;  %v992_v47 = vpop.f32.mrb[3].mxu1 }
 0x1ab   :  { %v1197_v39 = vadd.f32 %v3357_v14, %v992_v47 }
 0x1af   :  { %v3318_v48 = vpop.f32.mrb[4].mxu1 }
 0x1b0   :  { %3901 = vst [vmem:[#allocation26_spill] sm:$0xff] %v3318_v48  ;;  %v998_v49 = vpop.f32.mrb[5].mxu1 }
 0x1b1   :  { %v3320_v50 = vpop.f32.mrb[6].mxu1  ;;  %v1202_v22 = vadd.f32 %v3357_v14, %v998_v49 }
 0x1b2   :  { %3902 = vst [vmem:[#allocation27_spill] sm:$0xff] %v3320_v50  ;;  %v1002_v51 = vpop.f32.mrb[7].mxu1  ;;  %v1500_v50 = vld [vmem:[#allocation2 + $0x38] sm:$0xff] }
 0x1b3   :  { %v1207_v29 = vadd.f32 %v3357_v14, %v1002_v51 }
 0x1b7   :  { %v3322_v53 = vpop.f32.mrb[8].mxu1 }
 0x1b8   :  { %3903 = vst [vmem:[#allocation28_spill] sm:$0xff] %v3322_v53  ;;  %v3324_v54 = vpop.f32.mrb[9].mxu1 }
 0x1b9   :  { %v3326_v55 = vpop.f32.mrb[10].mxu1 }
 0x1ba   :  { %3904 = vst [vmem:[#allocation29_spill] sm:$0xff] %v3326_v55  ;;  %v3328_v56 = vpop.f32.mrb[11].mxu1 }
 0x1bb   :  { %v1217_v7 = vadd.f32 %v3357_v14, %v3328_v56 }
 0x1bf   :  { %v3333_v63 = vpop.f32.mrb[12].mxu1 }
 0x1c0   :  { %3906 = vst [vmem:[#allocation31_spill] sm:$0xff] %v3333_v63  ;;  %v3341_v3 = vpop.f32.mrb[13].mxu1 }
 0x1c1   :  { %v3343_v4 = vpop.f32.mrb[14].mxu1 }
 0x1c2   :  { %3907 = vst [vmem:[#allocation32_spill] sm:$0xff] %v3343_v4  ;;  %v3345_v5 = vpop.f32.mrb[15].mxu1 }
 0x1c4   :  { %v873_v58 = vpop.f32.mrb[0].mxu0 }
 0x1c5   :  { %v875_v59 = vpop.f32.mrb[1].mxu0  ;;  %v1189_v31 = vadd.f32 %v3348_v6, %v873_v58  ;;  %v1212_v58 = vadd.f32 %v3357_v14, %v3324_v54  ;;  %v1495_v54 = vld [vmem:[#allocation2 + $0x10] sm:$0xff] }
 0x1c6   :  { %v877_v60 = vpop.f32.mrb[2].mxu0  ;;  %v1190_v25 = vadd.f32 %v3352_v8, %v875_v59 }
 0x1c7   :  { %v879_v62 = vpop.f32.mrb[3].mxu0  ;;  %v3360_v18 = vpop.f32.mrb[16].mxu1  ;;  %v1194_v35 = vadd.f32 %v3348_v6, %v877_v60  ;;  %v1269_v41 = vmul.f32 0.5, %v1189_v31 }
 0x1c8   :  { %3908 = vst [vmem:[#allocation33_spill] sm:$0xff] %v3360_v18  ;;  %v3363_v21 = vpop.f32.mrb[17].mxu1  ;;  %v1195_v28 = vadd.f32 %v3352_v8, %v879_v62  ;;  %v1333_v34 = vmul.f32 0.5, %v1190_v25 }
 0x1c9   :  { %v3366_v24 = vpop.f32.mrb[18].mxu1  ;;  %v1270_v45 = vmul.f32 0.5, %v1194_v35 }
 0x1ca   :  { %3909 = vst [vmem:[#allocation34_spill] sm:$0xff] %v3366_v24  ;;  %v3369_v27 = vpop.f32.mrb[19].mxu1  ;;  %v1334_v36 = vmul.f32 0.5, %v1195_v28  ;;  %v1496_v28 = vld [vmem:[#allocation2 + $0x18] sm:$0xff] }
 0x1cc   :  { %v883_v9 = vpop.f32.mrb[4].mxu0 }
 0x1cd   :  { %v1199_v10 = vadd.f32 %v3348_v6, %v883_v9  ;;  %v885_v11 = vpop.f32.mrb[5].mxu0 }
 0x1ce   :  { %v1200_v12 = vadd.f32 %v3352_v8, %v885_v11  ;;  %v887_v13 = vpop.f32.mrb[6].mxu0 }
 0x1cf   :  { %v1271_v15 = vmul.f32 0.5, %v1199_v10  ;;  %v1204_v16 = vadd.f32 %v3348_v6, %v887_v13  ;;  %v889_v17 = vpop.f32.mrb[7].mxu0  ;;  %v3376_v38 = vpop.f32.mrb[20].mxu1 }
 0x1d0   :  { %v1335_v19 = vmul.f32 0.5, %v1200_v12  ;;  %v1205_v20 = vadd.f32 %v3352_v8, %v889_v17  ;;  %3910 = vst [vmem:[#allocation35_spill] sm:$0xff] %v3376_v38  ;;  %v3379_v40 = vpop.f32.mrb[21].mxu1 }
 0x1d1   :  { %2576 = vtanh.f32 %v1271_v15  ;;  %v1272_v23 = vmul.f32 0.5, %v1204_v16  ;;  %v3381_v42 = vpop.f32.mrb[22].mxu1 }
 0x1d2   :  { %2578 = vtanh.f32 %v1335_v19  ;;  %v1336_v26 = vmul.f32 0.5, %v1205_v20  ;;  %3911 = vst [vmem:[#allocation36_spill] sm:$0xff] %v3381_v42  ;;  %v3384_v51 = vpop.f32.mrb[23].mxu1 }
 0x1d3   :  { %2580 = vtanh.f32 %v1272_v23 }
 0x1d4   :  { %2582 = vtanh.f32 %v1336_v26  ;;  %v893_v30 = vpop.f32.mrb[8].mxu0 }
 0x1d5   :  { %2584 = vtanh.f32 %v1202_v22  ;;  %v895_v33 = vpop.f32.mrb[9].mxu0  ;;  %v1209_v60 = vadd.f32 %v3348_v6, %v893_v30 }
 0x1d6   :  { %v897_v0 = vpop.f32.mrb[10].mxu0  ;;  %2586 = vtanh.f32 %v1207_v29  ;;  %v1210_v49 = vadd.f32 %v3352_v8, %v895_v33 }
 0x1d7   :  { %v899_v37 = vpop.f32.mrb[11].mxu0  ;;  %2588 = vtanh.f32 %v1192_v32  ;;  %v1214_v22 = vadd.f32 %v3348_v6, %v897_v0  ;;  %v3397_v56 = vpop.f32.mrb[24].mxu1  ;;  %v1273_v29 = vmul.f32 0.5, %v1209_v60 }
 0x1d8   :  { %2590 = vtanh.f32 %v1333_v34  ;;  %v1215_v9 = vadd.f32 %v3352_v8, %v899_v37  ;;  %v1337_v15 = vmul.f32 0.5, %v1210_v49  ;;  %3912 = vst [vmem:[#allocation37_spill] sm:$0xff] %v3397_v56  ;;  %v3403_v31 = vpop.f32.mrb[25].mxu1 }
 0x1d9   :  { %2592 = vtanh.f32 %v1334_v36  ;;  %v3408_v0 = vpop.f32.mrb[26].mxu1 }
 0x1da   :  { %2594 = vtanh.f32 %v1197_v39  ;;  %v1338_v35 = vmul.f32 0.5, %v1215_v9  ;;  %3913 = vst [vmem:[#allocation38_spill] sm:$0xff] %v3408_v0  ;;  %v1222_v39 = vadd.f32 %v3357_v14, %v3341_v3  ;;  %v1227_v3 = vadd.f32 %v3357_v14, %v3345_v5 }
 0x1db   :  { %v2577_v52 = vpop.eup %2576  ;;  %2596 = vtanh.f32 %v1269_v41  ;;  %v3414_v41 = vpop.f32.mrb[27].mxu1 }
 0x1dc   :  { %v2579_v59 = vpop.eup %2578  ;;  %v1303_v47 = vadd.f32 1.0, %v2577_v52  ;;  %v903_v61 = vpop.f32.mrb[12].mxu0  ;;  %2598 = vtanh.f32 %v1270_v45 }
 0x1dd   :  { %v2581_v62 = vpop.eup %2580  ;;  %v1367_v2 = vadd.f32 1.0, %v2579_v59  ;;  %v905_v10 = vpop.f32.mrb[13].mxu0  ;;  %2600 = vtanh.f32 %v1212_v58  ;;  %v1219_v37 = vadd.f32 %v3348_v6, %v903_v61  ;;  %v1274_v58 = vmul.f32 0.5, %v1214_v22 }
 0x1de   :  { %v2583_v11 = vpop.eup %2582  ;;  %v3392_v12 = vmul.f32 0.5, %v1303_v47  ;;  %v1304_v13 = vadd.f32 1.0, %v2581_v62  ;;  %v907_v16 = vpop.f32.mrb[14].mxu0  ;;  %v1220_v30 = vadd.f32 %v3352_v8, %v905_v10  ;;  %2602 = vtanh.f32 %v1217_v7 }
 0x1df   :  { %v2585_v17 = vpop.eup %2584  ;;  %v3394_v19 = vmul.f32 0.5, %v1367_v2  ;;  %v1368_v20 = vadd.f32 1.0, %v2583_v11  ;;  %v909_v23 = vpop.f32.mrb[15].mxu0  ;;  %2604 = vtanh.f32 %v1337_v15  ;;  %v1275_v10 = vmul.f32 0.5, %v1219_v37 }
 0x1e0   :  { %v1527_v25 = vmul.f32 %v2585_v17, %v3392_v12  ;;  %v3400_v26 = vmul.f32 0.5, %v1304_v13  ;;  %v2587_v32 = vpop.eup %2586  ;;  %v1225_v59 = vadd.f32 %v3352_v8, %v909_v23  ;;  %2606 = vtanh.f32 %v1273_v29  ;;  %v3434_v5 = vpop.f32.mrb[28].mxu1 }
 0x1e1   :  { %v1511_v33 = vmul.f32 %v1495_v54, %v3394_v19  ;;  %v3406_v34 = vmul.f32 0.5, %v1368_v20  ;;  %v3416_v45 = vpop.eup %2588  ;;  %v1339_v60 = vmul.f32 0.5, %v1220_v30  ;;  %2608 = vtanh.f32 %v1338_v35  ;;  %3916 = vst [vmem:[#allocation41_spill] sm:$0xff] %v3434_v5  ;;  %v3438_v29 = vpop.f32.mrb[29].mxu1  ;;  %v1558_v5 = vld [vmem:[#allocation5 + $0x8] sm:$0xff] }
 0x1e2   :  { %v1528_v36 = vmul.f32 %v2587_v32, %v3400_v26  ;;  %v2591_v47 = vpop.eup %2590  ;;  %2610 = vtanh.f32 %v1222_v39  ;;  %v1224_v11 = vadd.f32 %v3348_v6, %v907_v16  ;;  %v1340_v17 = vmul.f32 0.5, %v1225_v59  ;;  %v3445_v35 = vpop.f32.mrb[30].mxu1 }
 0x1e3   :  { %v3418_v49 = vadd.f32 %v1527_v25, %v1511_v33  ;;  %v1512_v52 = vmul.f32 %v1496_v28, %v3406_v34  ;;  %v2593_v2 = vpop.eup %2592  ;;  %2612 = vtanh.f32 %v1274_v58  ;;  %v1365_v25 = vadd.f32 1.0, %v2591_v47  ;;  %3917 = vst [vmem:[#allocation42_spill] sm:$0xff] %v3445_v35 }
 0x1e4   :  { %v913_v62 = vpop.f32.mrb[16].mxu0  ;;  %v3427_v9 = vpop.eup %2594  ;;  %v1366_v28 = vadd.f32 1.0, %v2593_v2  ;;  %2614 = vtanh.f32 %v1339_v60  ;;  %v1232_v16 = vadd.f32 %v3357_v14, %v3363_v21  ;;  %v1237_v33 = vadd.f32 %v3357_v14, %v3369_v27 }
 0x1e5   :  { %3914 = vst [vmem:[#allocation39_spill] sm:$0xff] %v3418_v49  ;;  %2032 = vst [vmem:[#allocation14 + $0x10] sm:$0xff] %v3418_v49  ;;  %v3423_v61 = vadd.f32 %v1528_v36, %v1512_v52  ;;  %v915_v7 = vpop.f32.mrb[17].mxu0  ;;  %v2597_v13 = vpop.eup %2596  ;;  %2616 = vtanh.f32 %v1227_v3  ;;  %v1229_v32 = vadd.f32 %v3348_v6, %v913_v62  ;;  %v1182_v36 = vsub.s32 4, %v3330_v57 }
 0x1e6   :  { %v917_v54 = vpop.f32.mrb[18].mxu0  ;;  %v1230_v20 = vadd.f32 %v3352_v8, %v915_v7  ;;  %v2599_v23 = vpop.eup %2598  ;;  %v1301_v37 = vadd.f32 1.0, %v2597_v13  ;;  %2618 = vtanh.f32 %v1275_v10  ;;  %v1276_v39 = vmul.f32 0.5, %v1224_v11  ;;  %v1493_v7 = vld [vmem:[#allocation2] sm:$0xff] }
 0x1e7   :  { %3915 = vst [vmem:[#allocation40_spill] sm:$0xff] %v3423_v61  ;;  %2033 = vst [vmem:[#allocation14 + $0x18] sm:$0xff] %v3423_v61  ;;  %v919_v22 = vpop.f32.mrb[19].mxu0  ;;  %v3440_v30 = vpop.eup %2600  ;;  %v1302_v59 = vadd.f32 1.0, %v2599_v23  ;;  %2620 = vtanh.f32 %v1340_v17  ;;  %v1234_v60 = vadd.f32 %v3348_v6, %v917_v54  ;;  %v1381_v27 = vmul.f32 0.5, %v1365_v25  ;;  %v1557_v23 = vld [vmem:[#allocation5] sm:$0xff] }
 0x1e8   :  { %v1235_v52 = vadd.f32 %v3352_v8, %v919_v22  ;;  %v3449_v21 = vpop.f32.mrb[31].mxu1  ;;  %v3451_v58 = vpop.eup %2602  ;;  %v1341_v47 = vmul.f32 0.5, %v1230_v20  ;;  %v1382_v2 = vmul.f32 0.5, %v1366_v28  ;;  %2622 = vtanh.f32 %v1232_v16  ;;  %v1494_v17 = vld [vmem:[#allocation2 + $0x8] sm:$0xff] }
 0x1e9   :  { %v2605_v62 = vpop.eup %2604  ;;  %v1277_v13 = vmul.f32 0.5, %v1229_v32  ;;  %2624 = vtanh.f32 %v1237_v33  ;;  %v3455_v35 = vmul.f32 0.5, %v1301_v37  ;;  %v3459_v25 = vrot.slane %v3338_v1, %v1182_v36  ;;  %v1559_v36 = vld [vmem:[#allocation5 + $0x10] sm:$0xff] }
 0x1ea   :  { %v1342_v10 = vmul.f32 0.5, %v1235_v52  ;;  %v2607_v15 = vpop.eup %2606  ;;  %2626 = vtanh.f32 %v1276_v39  ;;  %v3461_v16 = vmul.f32 0.5, %v1302_v59  ;;  %v1369_v32 = vadd.f32 1.0, %v2605_v62 }
 0x1eb   :  { %v2609_v28 = vpop.eup %2608  ;;  %2628 = vtanh.f32 %v1341_v47  ;;  %v1278_v33 = vmul.f32 0.5, %v1234_v60  ;;  %v3465_v37 = vmul.f32 %v1493_v7, %v1381_v27  ;;  %v3467_v56 = vmul.f32 %v1557_v23, %v1381_v27  ;;  %v1560_v60 = vld [vmem:[#allocation5 + $0x18] sm:$0xff] }
 0x1ec   :  { %v923_v3 = vpop.f32.mrb[20].mxu0  ;;  %2630 = vtanh.f32 %v1342_v10  ;;  %v3469_v1 = vmul.f32 %v1494_v17, %v1382_v2  ;;  %v1305_v62 = vadd.f32 1.0, %v2607_v15  ;;  %v1370_v42 = vadd.f32 1.0, %v2609_v28  ;;  %v1497_v17 = vld [vmem:[#allocation2 + $0x20] sm:$0xff] }
 0x1ed   :  { %v1239_v11 = vadd.f32 %v3348_v6, %v923_v3  ;;  %v925_v22 = vpop.f32.mrb[21].mxu0  ;;  %v3463_v3 = vpop.eup %2610  ;;  %2632 = vtanh.f32 %v1277_v13  ;;  %v3475_v10 = vmul.f32 %v1558_v5, %v1382_v2  ;;  %v1242_v27 = vadd.f32 %v3357_v14, %v3379_v40 }
 0x1ee   :  { %v1240_v54 = vadd.f32 %v3352_v8, %v925_v22  ;;  %v927_v20 = vpop.f32.mrb[22].mxu0  ;;  %v2613_v22 = vpop.eup %2612  ;;  %v3480_v13 = vmul.f32 %v1559_v36, %v3394_v19  ;;  %v3488_v24 = vmul.f32 0.5, %v1305_v62  ;;  %v1386_v19 = vmul.f32 0.5, %v1370_v42 }
 0x1ef   :  { %v929_v52 = vpop.f32.mrb[23].mxu0  ;;  %v1279_v39 = vmul.f32 0.5, %v1239_v11  ;;  %v1244_v59 = vadd.f32 %v3348_v6, %v927_v20  ;;  %v2615_v47 = vpop.eup %2614  ;;  %v1385_v11 = vmul.f32 0.5, %v1369_v32  ;;  %v1306_v15 = vadd.f32 1.0, %v2613_v22 }
 0x1f0   :  { %v1343_v0 = vmul.f32 0.5, %v1240_v54  ;;  %v1245_v7 = vadd.f32 %v3352_v8, %v929_v52  ;;  %v3473_v38 = vpop.eup %2616  ;;  %v1561_v54 = vld [vmem:[#allocation5 + $0x20] sm:$0xff]  ;;  %v3483_v52 = vmul.f32 %v1560_v60, %v3406_v34  ;;  %v1371_v5 = vadd.f32 1.0, %v2615_v47  ;;  %v1498_v47 = vld [vmem:[#allocation2 + $0x28] sm:$0xff] }
 0x1f1   :  { %v2619_v23 = vpop.eup %2618  ;;  %v1280_v2 = vmul.f32 0.5, %v1244_v59  ;;  %v3495_v34 = vmul.f32 %v1561_v54, %v1385_v11  ;;  %v1562_v59 = vld [vmem:[#allocation5 + $0x28] sm:$0xff]  ;;  %v3497_v63 = vmul.f32 0.5, %v1306_v15  ;;  %v1247_v42 = vadd.f32 %v3357_v14, %v3384_v51 }
 0x1f2   :  { %2634 = vtanh.f32 %v1343_v0  ;;  %v1344_v0 = vmul.f32 0.5, %v1245_v7  ;;  %v2621_v28 = vpop.eup %2620  ;;  %v3493_v7 = vmul.f32 %v1497_v17, %v1385_v11  ;;  %v1307_v60 = vadd.f32 1.0, %v2619_v23 }
 0x1f3   :  { %2636 = vtanh.f32 %v1278_v33  ;;  %v3486_v40 = vpop.eup %2622  ;;  %v1372_v62 = vadd.f32 1.0, %v2621_v28  ;;  %v1387_v55 = vmul.f32 0.5, %v1371_v5  ;;  %v3503_v53 = vmul.f32 %v1498_v47, %v1386_v19 }
 0x1f4   :  { %2638 = vtanh.f32 %v1279_v39  ;;  %v933_v20 = vpop.f32.mrb[24].mxu0  ;;  %v3491_v36 = vpop.eup %2624  ;;  %v3505_v23 = vmul.f32 %v1562_v59, %v1386_v19  ;;  %v1252_v15 = vadd.f32 %v3357_v14, %v3403_v31  ;;  %v3509_v51 = vmul.f32 0.5, %v1307_v60 }
 0x1f5   :  { %v1249_v32 = vadd.f32 %v3348_v6, %v933_v20  ;;  %v935_v33 = vpop.f32.mrb[25].mxu0  ;;  %2640 = vtanh.f32 %v1344_v0  ;;  %v2627_v4 = vpop.eup %2626  ;;  %v1388_v46 = vmul.f32 0.5, %v1372_v62  ;;  %v1262_v19 = vadd.f32 %v3357_v14, %v3438_v29 }
 0x1f6   :  { %v1250_v22 = vadd.f32 %v3352_v8, %v935_v33  ;;  %v937_v39 = vpop.f32.mrb[26].mxu0  ;;  %v2629_v33 = vpop.eup %2628  ;;  %2642 = vtanh.f32 %v1280_v2  ;;  %v1308_v5 = vadd.f32 1.0, %v2627_v4  ;;  %v1257_v29 = vadd.f32 %v3357_v14, %v3414_v41  ;;  %v1502_v41 = vld [vmem:[#allocation2 + $0x48] sm:$0xff] }
 0x1f7   :  { %v1281_v20 = vmul.f32 0.5, %v1249_v32  ;;  %v939_v18 = vpop.f32.mrb[27].mxu0  ;;  %v1254_v17 = vadd.f32 %v3348_v6, %v937_v39  ;;  %v2631_v54 = vpop.eup %2630  ;;  %v1499_v32 = vld [vmem:[#allocation2 + $0x30] sm:$0xff]  ;;  %v1373_v31 = vadd.f32 1.0, %v2629_v33  ;;  %v3522_v49 = vmul.f32 %v1500_v50, %v1388_v46 }
 0x1f8   :  { %v1345_v0 = vmul.f32 0.5, %v1250_v22  ;;  %v1255_v11 = vadd.f32 %v3352_v8, %v939_v18  ;;  %v2633_v28 = vpop.eup %2632  ;;  %v1563_v22 = vld [vmem:[#allocation5 + $0x30] sm:$0xff]  ;;  %v1374_v44 = vadd.f32 1.0, %v2631_v54  ;;  %v3518_v57 = vmul.f32 0.5, %v1308_v5 }
 0x1f9   :  { %2644 = vtanh.f32 %v1281_v20  ;;  %v1282_v18 = vmul.f32 0.5, %v1254_v17  ;;  %v3513_v20 = vmul.f32 %v1499_v32, %v1387_v55  ;;  %v1309_v62 = vadd.f32 1.0, %v2633_v28 }
 0x1fa   :  { %2646 = vtanh.f32 %v1345_v0  ;;  %v1346_v2 = vmul.f32 0.5, %v1255_v11  ;;  %v3516_v0 = vmul.f32 %v1563_v22, %v1387_v55  ;;  %v1564_v11 = vld [vmem:[#allocation5 + $0x38] sm:$0xff]  ;;  %v3527_v28 = vmul.f32 0.5, %v1373_v31 }
 0x1fb   :  { %2648 = vtanh.f32 %v1242_v27  ;;  %v3525_v22 = vmul.f32 %v1564_v11, %v1388_v46  ;;  %v1267_v46 = vadd.f32 %v3357_v14, %v3449_v21  ;;  %v1525_v11 = vmul.f32 %v3416_v45, %v3455_v35  ;;  %v1567_v45 = vld [vmem:[#allocation5 + $0x50] sm:$0xff] }
 0x1fc   :  { %v2635_v39 = vpop.eup %2634  ;;  %v943_v47 = vpop.f32.mrb[28].mxu0  ;;  %2650 = vtanh.f32 %v1346_v2  ;;  %v3529_v2 = vmul.f32 0.5, %v1374_v44 }
 0x1fd   :  { %v2637_v59 = vpop.eup %2636  ;;  %v1259_v60 = vadd.f32 %v3348_v6, %v943_v47  ;;  %v945_v48 = vpop.f32.mrb[29].mxu0  ;;  %v1375_v27 = vadd.f32 1.0, %v2635_v39  ;;  %2652 = vtanh.f32 %v1247_v42  ;;  %v3531_v42 = vmul.f32 0.5, %v1309_v62  ;;  %v1501_v39 = vld [vmem:[#allocation2 + $0x40] sm:$0xff] }
 0x1fe   :  { %v2639_v4 = vpop.eup %2638  ;;  %v947_v17 = vpop.f32.mrb[30].mxu0  ;;  %v1310_v47 = vadd.f32 1.0, %v2637_v59  ;;  %2654 = vtanh.f32 %v1282_v18  ;;  %v1260_v55 = vadd.f32 %v3352_v8, %v945_v48  ;;  %3918 = vst [vmem:[#allocation43_spill] sm:$0xff] %v3529_v2 }
 0x1ff   :  { %v1283_v32 = vmul.f32 0.5, %v1259_v60  ;;  %v949_v33 = vpop.f32.mrb[31].mxu0  ;;  %v2641_v54 = vpop.eup %2640  ;;  %v1311_v5 = vadd.f32 1.0, %v2639_v4  ;;  %v1391_v60 = vmul.f32 0.5, %v1375_v27  ;;  %v1264_v48 = vadd.f32 %v3348_v6, %v947_v17 }
 0x200   :  { %v1347_v61 = vmul.f32 0.5, %v1260_v55  ;;  %v2643_v50 = vpop.eup %2642  ;;  %v1376_v59 = vadd.f32 1.0, %v2641_v54  ;;  %v3536_v44 = vmul.f32 0.5, %v1310_v47  ;;  %v1265_v31 = vadd.f32 %v3352_v8, %v949_v33 }
 0x201   :  { %2656 = vtanh.f32 %v1283_v32  ;;  %v3542_v27 = vmul.f32 %v1501_v39, %v3527_v28  ;;  %v3547_v6 = vmul.f32 0.5, %v1311_v5  ;;  %v1312_v8 = vadd.f32 1.0, %v2643_v50 }
 0x202   :  { %2658 = vtanh.f32 %v1252_v15  ;;  %v3545_v15 = vmul.f32 %v1502_v41, %v3529_v2  ;;  %v1284_v17 = vmul.f32 0.5, %v1264_v48  ;;  %v3553_v33 = vmul.f32 0.5, %v1376_v59  ;;  %v1504_v41 = vld [vmem:[#allocation2 + $0x58] sm:$0xff] }
 0x203   :  { %v2645_v18 = vpop.eup %2644  ;;  %2660 = vtanh.f32 %v1347_v61  ;;  %v3551_v61 = vmul.f32 %v1503_v43, %v1391_v60  ;;  %v1348_v47 = vmul.f32 0.5, %v1265_v31  ;;  %v1526_v59 = vmul.f32 %v3427_v9, %v3461_v16 }
 0x204   :  { %v2300_v4 = vpop.f32.mrb[32].mxu0  ;;  %v2647_v62 = vpop.eup %2646  ;;  %2662 = vtanh.f32 %v1257_v29  ;;  %v1313_v54 = vadd.f32 1.0, %v2645_v18  ;;  %v3563_v48 = vadd.f32 %v1525_v11, %v3465_v37  ;;  %v3565_v31 = vmul.f32 %v1567_v45, %v1391_v60  ;;  %v1505_v45 = vld [vmem:[#allocation2 + $0x60] sm:$0xff] }
 0x205   :  { %v1099_v14 = vpop.f32.mrb[33].mxu0  ;;  %v3549_v21 = vpop.eup %2648  ;;  %2664 = vtanh.f32 %v1262_v19  ;;  %v1203_v55 = vadd.f32 %v2300_v4, %v3459_v25  ;;  %v1377_v29 = vadd.f32 1.0, %v2647_v62  ;;  %v3567_v4 = vmul.f32 0.5, %v1312_v8 }
 0x206   :  { %v2301_v32 = vpop.f32.mrb[34].mxu0  ;;  %v2651_v5 = vpop.eup %2650  ;;  %2666 = vtanh.f32 %v1284_v17  ;;  %v1193_v2 = vadd.f32 %v3459_v25, %v1099_v14  ;;  %v3571_v14 = vmul.f32 %v1504_v41, %v3553_v33  ;;  %v3574_v17 = vadd.f32 %v1526_v59, %v3469_v1  ;;  %2030 = vst [vmem:[#allocation14] sm:$0xff] %v3563_v48 }
 0x207   :  { %v1102_v39 = vpop.f32.mrb[35].mxu0  ;;  %v1208_v43 = vadd.f32 %v2301_v32, %v3459_v25  ;;  %v3558_v50 = vpop.eup %2652  ;;  %v1378_v19 = vadd.f32 1.0, %v2651_v5  ;;  %2668 = vtanh.f32 %v1348_v47  ;;  %v1529_v9 = vmul.f32 %v3440_v30, %v3488_v24 }
 0x208   :  { %v2655_v18 = vpop.eup %2654  ;;  %2670 = vtanh.f32 %v1267_v46  ;;  %v1198_v62 = vadd.f32 %v3459_v25, %v1102_v39  ;;  %v3579_v60 = vmul.f32 0.5, %v1377_v29  ;;  %v1530_v46 = vmul.f32 %v3451_v58, %v3497_v63  ;;  %2031 = vst [vmem:[#allocation14 + $0x8] sm:$0xff] %v3574_v17 }
 0x209   :  { %2672 = vtanh.f32 %v1203_v55  ;;  %v1531_v8 = vmul.f32 %v3463_v3, %v3509_v51  ;;  %v3587_v1 = vmul.f32 0.5, %v1313_v54  ;;  %v1314_v47 = vadd.f32 1.0, %v2655_v18 }
 0x20a   :  { %2674 = vtanh.f32 %v1193_v2  ;;  %v3589_v55 = vmul.f32 0.5, %v1378_v19  ;;  %v3600_v59 = vadd.f32 %v1529_v9, %v3493_v7  ;;  %v3609_v3 = vadd.f32 %v1530_v46, %v3503_v53 }
 0x20b   :  { %v2657_v37 = vpop.eup %2656  ;;  %2676 = vtanh.f32 %v1208_v43  ;;  %v1532_v7 = vmul.f32 %v3473_v38, %v3518_v57  ;;  %v3617_v9 = vadd.f32 %v1531_v8, %v3513_v20  ;;  %v1533_v46 = vmul.f32 %v3486_v40, %v3531_v42 }
 0x20c   :  { %v2304_v11 = vpop.f32.mrb[36].mxu0  ;;  %v3585_v32 = vpop.eup %2658  ;;  %2678 = vtanh.f32 %v1198_v62  ;;  %v1315_v41 = vadd.f32 1.0, %v2657_v37  ;;  %3919 = vst [vmem:[#allocation44_spill] sm:$0xff] %v3600_v59  ;;  %v3605_v62 = vmul.f32 %v1505_v45, %v3579_v60  ;;  %3920 = vst [vmem:[#allocation45_spill] sm:$0xff] %v3609_v3  ;;  %v1534_v40 = vmul.f32 %v3491_v36, %v3536_v44 }
 0x20d   :  { %v1115_v30 = vpop.f32.mrb[37].mxu0  ;;  %v2661_v2 = vpop.eup %2660  ;;  %v1223_v39 = vadd.f32 %v2304_v11, %v3459_v25  ;;  %v1506_v11 = vld [vmem:[#allocation2 + $0x68] sm:$0xff]  ;;  %2034 = vst [vmem:[#allocation14 + $0x20] sm:$0xff] %v3600_v59  ;;  %3921 = vst [vmem:[#allocation46_spill] sm:$0xff] %v3617_v9 }
 0x20e   :  { %v1213_v58 = vadd.f32 %v3459_v25, %v1115_v30  ;;  %v2305_v5 = vpop.f32.mrb[38].mxu0  ;;  %v3596_v54 = vpop.eup %2662  ;;  %v1379_v29 = vadd.f32 1.0, %v2661_v2  ;;  %v3619_v2 = vmul.f32 0.5, %v1314_v47  ;;  %2035 = vst [vmem:[#allocation14 + $0x28] sm:$0xff] %v3609_v3  ;;  %v3629_v38 = vmul.f32 0.5, %v1315_v41  ;;  %2036 = vst [vmem:[#allocation14 + $0x30] sm:$0xff] %v3617_v9 }
 0x20f   :  { %v1228_v19 = vadd.f32 %v2305_v5, %v3459_v25  ;;  %v1118_v43 = vpop.f32.mrb[39].mxu0  ;;  %v3602_v18 = vpop.eup %2664  ;;  %2680 = vtanh.f32 %v1223_v39  ;;  %v1507_v39 = vld [vmem:[#allocation2 + $0x70] sm:$0xff]  ;;  %v3627_v5 = vmul.f32 %v1506_v11, %v3589_v55  ;;  %v3661_v3 = vadd.f32 %v1534_v40, %v3545_v15 }
 0x210   :  { %v1218_v30 = vadd.f32 %v3459_v25, %v1118_v43  ;;  %v3611_v37 = vmul.f32 0.5, %v1379_v29  ;;  %2682 = vtanh.f32 %v1213_v58  ;;  %v2667_v45 = vpop.eup %2666  ;;  %v3640_v43 = vadd.f32 %v1533_v46, %v3542_v27 }
 0x211   :  { %2684 = vtanh.f32 %v1228_v19  ;;  %v2669_v58 = vpop.eup %2668  ;;  %v1316_v20 = vadd.f32 1.0, %v2667_v45  ;;  %v3635_v19 = vadd.f32 %v1532_v7, %v3522_v49  ;;  %v1536_v49 = vmul.f32 %v3558_v50, %v3567_v4  ;;  %2039 = vst [vmem:[#allocation14 + $0x48] sm:$0xff] %v3661_v3 }
 0x212   :  { %2686 = vtanh.f32 %v1218_v30  ;;  %v3632_v8 = vpop.eup %2670  ;;  %v1380_v47 = vadd.f32 1.0, %v2669_v58  ;;  %v3643_v41 = vmul.f32 %v1507_v39, %v3611_v37  ;;  %v1508_v30 = vld [vmem:[#allocation2 + $0x78] sm:$0xff]  ;;  %v1535_v58 = vmul.f32 %v3549_v21, %v3547_v6  ;;  %2038 = vst [vmem:[#allocation14 + $0x40] sm:$0xff] %v3640_v43 }
 0x213   :  { %v2673_v11 = vpop.eup %2672  ;;  %2037 = vst [vmem:[#allocation14 + $0x38] sm:$0xff] %v3635_v19  ;;  %v1625_v40 = vpack.c.bf16 %v3661_v3, %v3640_v43 }
 0x214   :  { %v2308_v29 = vpop.f32.mrb[40].mxu0  ;;  %v2675_v7 = vpop.eup %2674  ;;  %v3650_v59 = vmul.f32 0.5, %v1380_v47  ;;  %v1591_v36 = vmul.f32 %v2673_v11, %v3392_v12 }
 0x215   :  { %v1243_v45 = vadd.f32 %v2308_v29, %v3459_v25  ;;  %v1131_v53 = vpop.f32.mrb[41].mxu0  ;;  %v2677_v29 = vpop.eup %2676  ;;  %v1589_v47 = vmul.f32 %v2675_v7, %v3455_v35 }
 0x216   :  { %v1233_v27 = vadd.f32 %v3459_v25, %v1131_v53  ;;  %v2309_v46 = vpop.f32.mrb[42].mxu0  ;;  %v2679_v12 = vpop.eup %2678  ;;  %v3663_v53 = vmul.f32 0.5, %v1316_v20  ;;  %v3666_v11 = vmul.f32 %v1508_v30, %v3650_v59  ;;  %v1592_v39 = vmul.f32 %v2677_v29, %v3400_v26 }
 0x217   :  { %2688 = vtanh.f32 %v1243_v45  ;;  %v1248_v21 = vadd.f32 %v2309_v46, %v3459_v25  ;;  %v1134_v50 = vpop.f32.mrb[43].mxu0  ;;  %v1590_v46 = vmul.f32 %v2679_v12, %v3461_v16  ;;  %v1605_v9 = vadd.f32 %v1589_v47, %v3467_v56 }
 0x218   :  { %2690 = vtanh.f32 %v1233_v27  ;;  %v1238_v45 = vadd.f32 %v3459_v25, %v1134_v50  ;;  %v1607_v15 = vadd.f32 %v1591_v36, %v3480_v13  ;;  %v1608_v20 = vadd.f32 %v1592_v39, %v3483_v52 }
 0x219   :  { %2692 = vtanh.f32 %v1248_v21  ;;  %v2681_v35 = vpop.eup %2680  ;;  %v3678_v26 = vadd.f32 %v1535_v58, %v3551_v61  ;;  %v1606_v7 = vadd.f32 %v1590_v46, %v3475_v10  ;;  %2046 = vst [vmem:[#allocation16] sm:$0xff] %v1605_v9  ;;  %v3683_v16 = vadd.f32 %v1536_v49, %v3571_v14 }
 0x21a   :  { %v2683_v30 = vpop.eup %2682  ;;  %2694 = vtanh.f32 %v1238_v45  ;;  %v1595_v56 = vmul.f32 %v2681_v35, %v3509_v51  ;;  %v1646_v36 = vpack.c.bf16 %v1608_v20, %v1607_v15  ;;  %2048 = vst [vmem:[#allocation16 + $0x10] sm:$0xff] %v1607_v15  ;;  %2049 = vst [vmem:[#allocation16 + $0x18] sm:$0xff] %v1608_v20  ;;  %v1537_v61 = vmul.f32 %v3585_v32, %v3587_v1  ;;  %v2569_v32 = vld [vmem:[#allocation10 + $0x8] sm:$0xff]   ;;  %v1565_v45 = vld [vmem:[#allocation5 + $0x40] sm:$0xff] }
 0x21b   :  { %v2685_v27 = vpop.eup %2684  ;;  %v1593_v52 = vmul.f32 %v2683_v30, %v3488_v24  ;;  %2040 = vst [vmem:[#allocation14 + $0x50] sm:$0xff] %v3678_v26  ;;  %v1538_v10 = vmul.f32 %v3596_v54, %v3619_v2  ;;  %v1645_v51 = vpack.c.bf16 %v1606_v7, %v1605_v9  ;;  %2047 = vst [vmem:[#allocation16 + $0x8] sm:$0xff] %v1606_v7  ;;  %v1568_v15 = vld [vmem:[#allocation5 + $0x58] sm:$0xff]  ;;  %v3922_v20 = vld [vmem:[#allocation23_spill] sm:$0xff] }
 0x21c   :  { %v2312_v13 = vpop.f32.mrb[44].mxu0  ;;  %v2687_v58 = vpop.eup %2686  ;;  %v1596_v39 = vmul.f32 %v2685_v27, %v3518_v57  ;;  %v3694_v29 = vadd.f32 %v1595_v56, %v3516_v0  ;;  %2041 = vst [vmem:[#allocation14 + $0x58] sm:$0xff] %v3683_v16  ;;  %v1626_v9 = vpack.c.bf16 %v3683_v16, %v3678_v26  ;;  %v3706_v12 = vadd.f32 %v1537_v61, %v3605_v62  ;;  %v2570_v30 = vld [vmem:[#allocation10 + $0x10] sm:$0xff]  }
 0x21d   :  { %v1263_v14 = vadd.f32 %v2312_v13, %v3459_v25  ;;  %v1147_v49 = vpop.f32.mrb[45].mxu0  ;;  %v1594_v50 = vmul.f32 %v2687_v58, %v3497_v63  ;;  %v1609_v54 = vadd.f32 %v1593_v52, %v3495_v34  ;;  %2330 = vmatprep.mubr.bf16.mxu1 %v1645_v51  ;;  %v3711_v46 = vadd.f32 %v1538_v10, %v3627_v5 }
 0x21e   :  { %v1253_v24 = vadd.f32 %v3459_v25, %v1147_v49  ;;  %v2313_v21 = vpop.f32.mrb[46].mxu0  ;;  %v1612_v0 = vadd.f32 %v1596_v39, %v3525_v22  ;;  %2052 = vst [vmem:[#allocation16 + $0x30] sm:$0xff] %v3694_v29  ;;  %2331 = vmatmul.mubr.bf16.vlgmr.msra.gmra.mrb[32].mxu1 %v1646_v36  ;;  %2042 = vst [vmem:[#allocation14 + $0x60] sm:$0xff] %v3706_v12  ;;  %v1539_v62 = vmul.f32 %v3602_v18, %v3629_v38  ;;  %v1566_v18 = vld [vmem:[#allocation5 + $0x48] sm:$0xff] }
 0x21f   :  { %2696 = vtanh.f32 %v1263_v14  ;;  %v1268_v57 = vadd.f32 %v2313_v21, %v3459_v25  ;;  %v1150_v47 = vpop.f32.mrb[47].mxu0  ;;  %v1610_v34 = vadd.f32 %v1594_v50, %v3505_v23  ;;  %2050 = vst [vmem:[#allocation16 + $0x20] sm:$0xff] %v1609_v54  ;;  %2347 = vmatpush3.bf16.msra.mxu1 %v3922_v20  ;;  %v1627_v56 = vpack.c.bf16 %v3711_v46, %v3706_v12 }
 0x220   :  { %2698 = vtanh.f32 %v1253_v24  ;;  %v1258_v63 = vadd.f32 %v3459_v25, %v1150_v47  ;;  %v1648_v22 = vpack.c.bf16 %v1612_v0, %v3694_v29  ;;  %2053 = vst [vmem:[#allocation16 + $0x38] sm:$0xff] %v1612_v0  ;;  %v1540_v25 = vmul.f32 %v3632_v8, %v3663_v53  ;;  %2348 = vmatprep.subr.bf16.mxu1 %v2569_v32  ;;  %v1572_v24 = vld [vmem:[#allocation5 + $0x78] sm:$0xff] }
 0x221   :  { %v2689_v35 = vpop.eup %2688  ;;  %2700 = vtanh.f32 %v1268_v57  ;;  %v1647_v5 = vpack.c.bf16 %v1610_v34, %v1609_v54  ;;  %2051 = vst [vmem:[#allocation16 + $0x28] sm:$0xff] %v1610_v34  ;;  %2043 = vst [vmem:[#allocation14 + $0x68] sm:$0xff] %v3711_v46  ;;  %v1581_v13 = vmul.f32 %v1565_v45, %v3527_v28  ;;  %v3727_v8 = vadd.f32 %v1539_v62, %v3643_v41 }
 0x222   :  { %v2691_v23 = vpop.eup %2690  ;;  %2702 = vtanh.f32 %v1258_v63  ;;  %v1599_v7 = vmul.f32 %v2689_v35, %v3547_v6  ;;  %v3730_v52 = vadd.f32 %v1540_v25, %v3666_v11  ;;  %v1584_v61 = vmul.f32 %v1568_v15, %v3553_v33  ;;  %v2571_v11 = vld [vmem:[#allocation10 + $0x18] sm:$0xff]   ;;  %v3925_v25 = vld [vmem:[#allocation40_spill] sm:$0xff] }
 0x223   :  { %v2693_v27 = vpop.eup %2692  ;;  %v1597_v36 = vmul.f32 %v2691_v23, %v3531_v42  ;;  %2334 = vmatprep.mubr.bf16.mxu1 %v1647_v5  ;;  %2349 = vmatpush3.bf16.msra.mxu1 %v2569_v32  ;;  %2044 = vst [vmem:[#allocation14 + $0x70] sm:$0xff] %v3727_v8  ;;  %v3923_v42 = vld [vmem:[#allocation43_spill] sm:$0xff]  ;;  %v1570_v32 = vld [vmem:[#allocation5 + $0x68] sm:$0xff]  ;;  %v1588_v34 = vmul.f32 %v1572_v24, %v3650_v59 }
 0x224   :  { %v1600_v6 = vmul.f32 %v2693_v27, %v3567_v4  ;;  %v1615_v10 = vadd.f32 %v1599_v7, %v3565_v31  ;;  %v2695_v58 = vpop.eup %2694  ;;  %v1628_v28 = vpack.c.bf16 %v3730_v52, %v3727_v8  ;;  %2045 = vst [vmem:[#allocation14 + $0x78] sm:$0xff] %v3730_v52  ;;  %v1582_v41 = vmul.f32 %v1566_v18, %v3923_v42  ;;  %v1571_v4 = vld [vmem:[#allocation5 + $0x70] sm:$0xff]  ;;  %v1569_v31 = vld [vmem:[#allocation5 + $0x60] sm:$0xff]  ;;  %v3929_v7 = vld [vmem:[#allocation44_spill] sm:$0xff] }
 0x225   :  { %v1613_v51 = vadd.f32 %v1597_v36, %v1581_v13  ;;  %2350 = vmatprep.subr.bf16.mxu1 %v2570_v30  ;;  %v1598_v33 = vmul.f32 %v2695_v58, %v3536_v44  ;;  %v1587_v50 = vmul.f32 %v1571_v4, %v3611_v37  ;;  %v2572_v44 = vld [vmem:[#allocation10 + $0x20] sm:$0xff]   ;;  %v1585_v0 = vmul.f32 %v1569_v31, %v3579_v60  ;;  %v3931_v13 = vld [vmem:[#allocation46_spill] sm:$0xff] }
 0x226   :  { %v1616_v14 = vadd.f32 %v1600_v6, %v1584_v61  ;;  %2056 = vst [vmem:[#allocation16 + $0x50] sm:$0xff] %v1615_v10  ;;  %2335 = vmatmul.mubr.bf16.gmra.mrb[36].mxu1 %v1648_v22  ;;  %v1586_v37 = vmul.f32 %v1570_v32, %v3589_v55  ;;  %v2575_v55 = vld [vmem:[#allocation10 + $0x38] sm:$0xff]   ;;  %v3926_v23 = vld [vmem:[#allocation39_spill] sm:$0xff]  ;;  %v3932_v18 = vpack.c.bf16 %v3635_v19, %v3931_v13 }
 0x227   :  { %2054 = vst [vmem:[#allocation16 + $0x40] sm:$0xff] %v1613_v51  ;;  %v1614_v49 = vadd.f32 %v1598_v33, %v1582_v41  ;;  %2351 = vmatpush3.bf16.msra.mxu1 %v2570_v30  ;;  %v3927_v5 = vpack.c.bf16 %v3925_v25, %v3926_v23  ;;  %v3928_v30 = vld [vmem:[#allocation45_spill] sm:$0xff] }
 0x228   :  { %v1650_v39 = vpack.c.bf16 %v1616_v14, %v1615_v10  ;;  %2057 = vst [vmem:[#allocation16 + $0x58] sm:$0xff] %v1616_v14  ;;  %2352 = vmatprep.subr.bf16.mxu1 %v2571_v11  ;;  %v3930_v27 = vpack.c.bf16 %v3928_v30, %v3929_v7 }
 0x229   :  { %v2697_v29 = vpop.eup %2696  ;;  %v1649_v54 = vpack.c.bf16 %v1614_v49, %v1613_v51  ;;  %2055 = vst [vmem:[#allocation16 + $0x48] sm:$0xff] %v1614_v49 }
 0x22a   :  { %v2699_v21 = vpop.eup %2698  ;;  %v1603_v57 = vmul.f32 %v2697_v29, %v3629_v38  ;;  %v2573_v38 = vld [vmem:[#allocation10 + $0x28] sm:$0xff]  }
 0x22b   :  { %v2701_v47 = vpop.eup %2700  ;;  %v1601_v45 = vmul.f32 %v2699_v21, %v3587_v1  ;;  %2338 = vmatprep.mubr.bf16.mxu1 %v1649_v54  ;;  %2353 = vmatpush3.bf16.msra.mxu1 %v2571_v11 }
 0x22c   :  { %v2703_v63 = vpop.eup %2702  ;;  %v1604_v35 = vmul.f32 %v2701_v47, %v3663_v53  ;;  %v1619_v15 = vadd.f32 %v1603_v57, %v1587_v50  ;;  %2354 = vmatprep.subr.bf16.mxu1 %v2572_v44  ;;  %v2574_v53 = vld [vmem:[#allocation10 + $0x30] sm:$0xff]  }
 0x22d   :  { %v1602_v20 = vmul.f32 %v2703_v63, %v3619_v2  ;;  %v1617_v22 = vadd.f32 %v1601_v45, %v1585_v0  ;;  %v3924_v2 = vpack.c.bf16 %v3574_v17, %v3563_v48 }
 0x22e   :  { %v1620_v62 = vadd.f32 %v1604_v35, %v1588_v34  ;;  %2060 = vst [vmem:[#allocation16 + $0x70] sm:$0xff] %v1619_v15  ;;  %2339 = vmatmul.mubr.bf16.gmra.mrb[40].mxu1 %v1650_v39 }
 0x22f   :  { %v1618_v60 = vadd.f32 %v1602_v20, %v1586_v37  ;;  %2058 = vst [vmem:[#allocation16 + $0x60] sm:$0xff] %v1617_v22  ;;  %2355 = vmatpush3.bf16.msra.mxu1 %v2572_v44 }
 0x230   :  { %v1652_v1 = vpack.c.bf16 %v1620_v62, %v1619_v15  ;;  %2061 = vst [vmem:[#allocation16 + $0x78] sm:$0xff] %v1620_v62  ;;  %2356 = vmatprep.subr.bf16.mxu1 %v2573_v38 }
 0x231   :  { %v1651_v59 = vpack.c.bf16 %v1618_v60, %v1617_v22  ;;  %2059 = vst [vmem:[#allocation16 + $0x68] sm:$0xff] %v1618_v60 }
 0x233   :  { %2342 = vmatprep.mubr.bf16.mxu1 %v1651_v59  ;;  %2357 = vmatpush3.bf16.msra.mxu1 %v2573_v38 }
 0x234   :  { %2358 = vmatprep.subr.bf16.mxu1 %v2574_v53 }
 0x236   :  { %2343 = vmatmul.mubr.bf16.gmra.mrb[44].mxu1 %v1652_v1 }
 0x237   :  { %2359 = vmatpush3.bf16.msra.mxu1 %v2574_v53  ;;  %2362 = vmatprep.mubr.bf16.mxu1 %v3924_v2 }
 0x238   :  { %2360 = vmatprep.subr.bf16.mxu1 %v2575_v55 }
 0x23b   :  { %2361 = vmatpush3.bf16.msra.mxu1 %v2575_v55 }
 0x23e   :  { %2363 = vmatmul.mubr.bf16.vlgmr.msra.gmra.mrb[32].mxu1 %v3927_v5 }
 0x23f   :  { %2366 = vmatprep.mubr.bf16.mxu1 %v3930_v27 }
 0x246   :  { %2367 = vmatmul.mubr.bf16.gmra.mrb[36].mxu1 %v3932_v18 }
 0x247   :  { %2370 = vmatprep.mubr.bf16.mxu1 %v1625_v40 }
 0x24e   :  { %2371 = vmatmul.mubr.bf16.gmra.mrb[40].mxu1 %v1626_v9 }
 0x24f   :  { %2374 = vmatprep.mubr.bf16.mxu1 %v1627_v56 }
 0x256   :  { %2375 = vmatmul.mubr.bf16.gmra.mrb[44].mxu1 %v1628_v28 }
 0x257   :  { %2912 = shalt.err (!%p2909_p10)
}
 0x258   :  { %s2913_s3 = scalar_lea.hbm %s3888_s11, 2048 }
 0x259   :  { %p2914_p11 = scmp.ne.s32.totalorder %s3888_s11, %s2913_s3  ;;  %p2917_p12 = scmp.lt.u32.totalorder %s2913_s3, %s3888_s11 }
 0x25b   :  { %p2919_p13 = pnand %p2917_p12, %p2914_p11 }
 0x25d   :  { %2922 = shalt.err (!%p2919_p13)
}
 0x25e   :  { %2085 = dma.vmem_to_hbm [thread:$0]  %s2080_s7, 2048, %s3888_s11, [#allocation15], %s2980_s13, %s2980_s13, %s2981_s14  }
 0x25f   :  { %s2993_s28 = smov [#allocation16]  }
 0x260   :  { %s2091_s1 = sshll.u32 %s2993_s28, 4  ;;  %s2092_s1 = int_to_ptr.vmem [resolvable:$true] %s2091_s1 }
 0x261   :  { %s2923_s19 = scalar_lea.vmem %s2092_s1, 2048  ;;  %p2928_p1 = scmp.lt.s32.totalorder %s2092_s1, %s2092_s1 }
 0x262   :  { %p2924_p0 = scmp.ne.s32.totalorder %s2092_s1, %s2923_s19  ;;  %p2929_p2 = scmp.lt.s32.totalorder %s2923_s19, %s2923_s19 }
 0x264   :  { %p2930_p3 = por %p2929_p2, %p2928_p1 }
 0x266   :  { %p2931_p4 = pnand %p2930_p3, %p2924_p0 }
 0x268   :  { %2934 = shalt.err (!%p2931_p4)
}
 0x269   :  { %s2935_s24 = scalar_lea.hbm %s3889_s12, 2048 }
 0x26a   :  { %p2936_p5 = scmp.ne.s32.totalorder %s3889_s12, %s2935_s24  ;;  %p2939_p6 = scmp.lt.u32.totalorder %s2935_s24, %s3889_s12 }
 0x26c   :  { %p2941_p7 = pnand %p2939_p6, %p2936_p5 }
 0x26e   :  { %2944 = shalt.err (!%p2941_p7)
}
 0x26f   :  { %2097 = dma.vmem_to_hbm [thread:$0]  %s2092_s1, 2048, %s3889_s12, [#allocation15], %s2980_s13, %s2980_s13, %s2981_s14   ;;  %v3933_v48 = vld [vmem:[#allocation30_spill] sm:$0xff]  ;;  %v3935_v26 = vld [vmem:[#allocation24_spill] sm:$0xff]  ;;  %v3936_v9 = vld [vmem:[#allocation27_spill] sm:$0xff] }
 0x270   :  { %v1174_v17 = vsub.s32 2, %v3933_v48  ;;  %v2768_v3 = vld [vmem:[%s3883_s6] sm:$0x1f]  ;;  %v3934_v43 = vld [vmem:[#allocation26_spill] sm:$0xff]  ;;  %v3938_v8 = vld [vmem:[#allocation28_spill] sm:$0xff] }
 0x271   :  { %v3937_v46 = vld [vmem:[#allocation25_spill] sm:$0xff]  ;;  %v3940_v51 = vld [vmem:[#allocation31_spill] sm:$0xff]  ;;  %v3941_v41 = vld [vmem:[#allocation32_spill] sm:$0xff] }
 0x272   :  { %v3807_v19 = vrot.slane %v2768_v3, %v1174_v17  ;;  %v3939_v6 = vld [vmem:[#allocation29_spill] sm:$0xff]  ;;  %v3943_v24 = vld [vmem:[#allocation34_spill] sm:$0xff]  ;;  %v3944_v50 = vld [vmem:[#allocation35_spill] sm:$0xff] }
 0x273   :  { %v3828_v49 = vld [vmem:[%s3886_s9] ss:$0 sm:$0xff]  ;;  %v3945_v47 = vld [vmem:[#allocation36_spill] sm:$0xff]  ;;  %v3947_v25 = vld [vmem:[#allocation38_spill] sm:$0xff]  ;;  %s2994_s9 = smov [#allocation13]  }
 0x274   :  { %v1201_v40 = vadd.f32 %v3807_v19, %v3934_v43  ;;  %v1191_v16 = vadd.f32 %v3807_v19, %v3935_v26  ;;  %v1206_v12 = vadd.f32 %v3807_v19, %v3936_v9  ;;  %v1196_v56 = vadd.f32 %v3807_v19, %v3937_v46  ;;  %v3942_v39 = vld [vmem:[#allocation33_spill] sm:$0xff]  ;;  %v3949_v43 = vld [vmem:[#allocation42_spill] sm:$0xff]  ;;  %s2067_s7 = sshll.u32 %s2994_s9, 4  ;;  %s2068_s7 = int_to_ptr.vmem [resolvable:$true] %s2067_s7 }
 0x275   :  { %v1211_v52 = vadd.f32 %v3807_v19, %v3938_v8  ;;  %v1216_v10 = vadd.f32 %v3807_v19, %v3939_v6  ;;  %v1221_v28 = vadd.f32 %v3807_v19, %v3940_v51  ;;  %v1226_v11 = vadd.f32 %v3807_v19, %v3941_v41  ;;  %v3946_v59 = vld [vmem:[#allocation37_spill] sm:$0xff]  ;;  %s2945_s30 = scalar_lea.vmem %s2068_s7, 2048  ;;  %p2950_p9 = scmp.lt.s32.totalorder %s2068_s7, %s2068_s7 }
 0x276   :  { %v1399_v36 = vmul.f32 0.5, %v1201_v40  ;;  %v1397_v61 = vmul.f32 0.5, %v1191_v16  ;;  %v1400_v58 = vmul.f32 0.5, %v1206_v12  ;;  %v1398_v42 = vmul.f32 0.5, %v1196_v56  ;;  %v3948_v27 = vld [vmem:[#allocation41_spill] sm:$0xff]  ;;  %p2946_p8 = scmp.ne.s32.totalorder %s2068_s7, %s2945_s30  ;;  %p2951_p10 = scmp.lt.s32.totalorder %s2945_s30, %s2945_s30 }
 0x277   :  { %v1401_v33 = vmul.f32 0.5, %v1211_v52  ;;  %v1402_v14 = vmul.f32 0.5, %v1216_v10  ;;  %v1403_v4 = vmul.f32 0.5, %v1221_v28  ;;  %v1404_v31 = vmul.f32 0.5, %v1226_v11 }
 0x278   :  { %2704 = vtanh.f32 %v1399_v36  ;;  %v1231_v29 = vadd.f32 %v3807_v19, %v3942_v39  ;;  %v1236_v21 = vadd.f32 %v3807_v19, %v3943_v24  ;;  %v1241_v54 = vadd.f32 %v3807_v19, %v3944_v50  ;;  %p2952_p11 = por %p2951_p10, %p2950_p9 }
 0x279   :  { %2706 = vtanh.f32 %v1397_v61  ;;  %v1246_v0 = vadd.f32 %v3807_v19, %v3945_v47  ;;  %v1251_v53 = vadd.f32 %v3807_v19, %v3946_v59  ;;  %v1256_v23 = vadd.f32 %v3807_v19, %v3947_v25 }
 0x27a   :  { %2708 = vtanh.f32 %v1400_v58  ;;  %v1405_v34 = vmul.f32 0.5, %v1231_v29  ;;  %v1406_v37 = vmul.f32 0.5, %v1236_v21  ;;  %v1407_v38 = vmul.f32 0.5, %v1241_v54  ;;  %p2953_p12 = pnand %p2952_p11, %p2946_p8 }
 0x27b   :  { %2710 = vtanh.f32 %v1398_v42  ;;  %v1408_v60 = vmul.f32 0.5, %v1246_v0  ;;  %v1261_v13 = vadd.f32 %v3807_v19, %v3948_v27  ;;  %v1266_v40 = vadd.f32 %v3807_v19, %v3949_v43 }
 0x27c   :  { %2712 = vtanh.f32 %v1401_v33  ;;  %v1409_v46 = vmul.f32 0.5, %v1251_v53  ;;  %v1410_v61 = vmul.f32 0.5, %v1256_v23 }
 0x27d   :  { %2714 = vtanh.f32 %v1402_v14  ;;  %v1411_v51 = vmul.f32 0.5, %v1261_v13  ;;  %v1412_v42 = vmul.f32 0.5, %v1266_v40 }
 0x27e   :  { %2716 = vtanh.f32 %v1403_v4 }
 0x27f   :  { %2718 = vtanh.f32 %v1404_v31 }
 0x282   :  { %v2705_v22 = vpop.eup %2704 }
 0x283   :  { %v2707_v62 = vpop.eup %2706  ;;  %v1431_v2 = vadd.f32 1.0, %v2705_v22 }
 0x284   :  { %v2709_v1 = vpop.eup %2708  ;;  %v1429_v7 = vadd.f32 1.0, %v2707_v62 }
 0x285   :  { %v2711_v55 = vpop.eup %2710  ;;  %v1432_v3 = vadd.f32 1.0, %v2709_v1  ;;  %v1447_v52 = vmul.f32 0.5, %v1431_v2 }
 0x286   :  { %v2713_v30 = vpop.eup %2712  ;;  %v1430_v12 = vadd.f32 1.0, %v2711_v55  ;;  %v1445_v58 = vmul.f32 0.5, %v1429_v7 }
 0x287   :  { %v2715_v17 = vpop.eup %2714  ;;  %v1448_v28 = vmul.f32 0.5, %v1432_v3  ;;  %v1433_v21 = vadd.f32 1.0, %v2713_v30 }
 0x288   :  { %v2717_v9 = vpop.eup %2716  ;;  %v1446_v33 = vmul.f32 0.5, %v1430_v12 }
 0x289   :  { %v2719_v8 = vpop.eup %2718  ;;  %v1435_v31 = vadd.f32 1.0, %v2717_v9 }
 0x311   :  { %v2364_v32 = vpop.f32.mrb[32].mxu1 }
 0x312   :  { %v1968_v44 = vadd.f32 %v2364_v32, %v3828_v49  ;;  %v1896_v57 = vpop.f32.mrb[33].mxu1 }
 0x313   :  { %v1966_v45 = vadd.f32 %v3828_v49, %v1896_v57  ;;  %v2365_v63 = vpop.f32.mrb[34].mxu1  ;;  %v1436_v57 = vadd.f32 1.0, %v2719_v8 }
 0x314   :  { %2720 = vtanh.f32 %v1968_v44  ;;  %v1969_v35 = vadd.f32 %v2365_v63, %v3828_v49  ;;  %v1899_v15 = vpop.f32.mrb[35].mxu1  ;;  %v1434_v63 = vadd.f32 1.0, %v2715_v17 }
 0x315   :  { %2722 = vtanh.f32 %v1966_v45  ;;  %v1967_v20 = vadd.f32 %v3828_v49, %v1899_v15 }
 0x316   :  { %2724 = vtanh.f32 %v1969_v35  ;;  %v1450_v53 = vmul.f32 0.5, %v1434_v63 }
 0x317   :  { %2726 = vtanh.f32 %v1967_v20 }
 0x318   :  { %2728 = vtanh.f32 %v1405_v34 }
 0x319   :  { %2730 = vtanh.f32 %v1406_v37  ;;  %v2368_v5 = vpop.f32.mrb[36].mxu1  ;;  %v1451_v37 = vmul.f32 0.5, %v1435_v31 }
 0x31a   :  { %2732 = vtanh.f32 %v1407_v38  ;;  %v1972_v18 = vadd.f32 %v2368_v5, %v3828_v49  ;;  %v1912_v48 = vpop.f32.mrb[37].mxu1  ;;  %v1449_v38 = vmul.f32 0.5, %v1433_v21 }
 0x31b   :  { %2734 = vtanh.f32 %v1408_v60  ;;  %v1970_v26 = vadd.f32 %v3828_v49, %v1912_v48  ;;  %v2369_v16 = vpop.f32.mrb[38].mxu1  ;;  %v1452_v60 = vmul.f32 0.5, %v1436_v57 }
 0x31c   :  { %2736 = vtanh.f32 %v1972_v18  ;;  %v1973_v56 = vadd.f32 %v2369_v16, %v3828_v49  ;;  %v1915_v36 = vpop.f32.mrb[39].mxu1 }
 0x31d   :  { %2738 = vtanh.f32 %v1970_v26  ;;  %v1971_v6 = vadd.f32 %v3828_v49, %v1915_v36 }
 0x31e   :  { %v2721_v10 = vpop.eup %2720  ;;  %2740 = vtanh.f32 %v1973_v56 }
 0x31f   :  { %v2723_v19 = vpop.eup %2722  ;;  %v2000_v41 = vmul.f32 %v2721_v10, %v1447_v52  ;;  %2742 = vtanh.f32 %v1971_v6 }
 0x320   :  { %v2725_v11 = vpop.eup %2724  ;;  %2744 = vtanh.f32 %v1409_v46  ;;  %v1998_v14 = vmul.f32 %v2723_v19, %v1445_v58 }
 0x321   :  { %v2727_v4 = vpop.eup %2726  ;;  %2746 = vtanh.f32 %v1410_v61  ;;  %2016 = vst [vmem:[#allocation13 + $0x10] sm:$0xff] %v2000_v41  ;;  %v2001_v39 = vmul.f32 %v2725_v11, %v1448_v28  ;;  %v2372_v29 = vpop.f32.mrb[40].mxu1 }
 0x322   :  { %v2729_v24 = vpop.eup %2728  ;;  %2748 = vtanh.f32 %v1411_v51  ;;  %2014 = vst [vmem:[#allocation13] sm:$0xff] %v1998_v14  ;;  %v1999_v32 = vmul.f32 %v2727_v4, %v1446_v33  ;;  %v1976_v50 = vadd.f32 %v2372_v29, %v3828_v49  ;;  %v1928_v54 = vpop.f32.mrb[41].mxu1 }
 0x323   :  { %v2731_v44 = vpop.eup %2730  ;;  %2750 = vtanh.f32 %v1412_v42  ;;  %2017 = vst [vmem:[#allocation13 + $0x18] sm:$0xff] %v2001_v39  ;;  %v1974_v47 = vadd.f32 %v3828_v49, %v1928_v54  ;;  %v2373_v0 = vpop.f32.mrb[42].mxu1  ;;  %v1437_v7 = vadd.f32 1.0, %v2729_v24 }
 0x324   :  { %v2733_v45 = vpop.eup %2732  ;;  %2015 = vst [vmem:[#allocation13 + $0x8] sm:$0xff] %v1999_v32  ;;  %2752 = vtanh.f32 %v1976_v50  ;;  %v1977_v34 = vadd.f32 %v2373_v0, %v3828_v49  ;;  %v1931_v35 = vpop.f32.mrb[43].mxu1  ;;  %v1438_v26 = vadd.f32 1.0, %v2731_v44 }
 0x325   :  { %v2735_v15 = vpop.eup %2734  ;;  %2754 = vtanh.f32 %v1974_v47  ;;  %v1975_v20 = vadd.f32 %v3828_v49, %v1931_v35  ;;  %v1439_v25 = vadd.f32 1.0, %v2733_v45  ;;  %v1453_v8 = vmul.f32 0.5, %v1437_v7 }
 0x326   :  { %v2737_v22 = vpop.eup %2736  ;;  %2756 = vtanh.f32 %v1977_v34  ;;  %v1440_v17 = vadd.f32 1.0, %v2735_v15  ;;  %v1454_v58 = vmul.f32 0.5, %v1438_v26 }
 0x327   :  { %v2739_v62 = vpop.eup %2738  ;;  %v2004_v1 = vmul.f32 %v2737_v22, %v1451_v37  ;;  %2758 = vtanh.f32 %v1975_v20  ;;  %v1455_v46 = vmul.f32 0.5, %v1439_v25 }
 0x328   :  { %v2741_v59 = vpop.eup %2740  ;;  %v2002_v55 = vmul.f32 %v2739_v62, %v1449_v38  ;;  %v1456_v61 = vmul.f32 0.5, %v1440_v17 }
 0x329   :  { %v2743_v2 = vpop.eup %2742  ;;  %2020 = vst [vmem:[#allocation13 + $0x30] sm:$0xff] %v2004_v1  ;;  %v2005_v23 = vmul.f32 %v2741_v59, %v1452_v60  ;;  %v2376_v5 = vpop.f32.mrb[44].mxu1 }
 0x32a   :  { %v2745_v30 = vpop.eup %2744  ;;  %2018 = vst [vmem:[#allocation13 + $0x20] sm:$0xff] %v2002_v55  ;;  %v2003_v27 = vmul.f32 %v2743_v2, %v1450_v53  ;;  %v1980_v13 = vadd.f32 %v2376_v5, %v3828_v49  ;;  %v1944_v18 = vpop.f32.mrb[45].mxu1 }
 0x32b   :  { %v2747_v48 = vpop.eup %2746  ;;  %2021 = vst [vmem:[#allocation13 + $0x38] sm:$0xff] %v2005_v23  ;;  %v1978_v3 = vadd.f32 %v3828_v49, %v1944_v18  ;;  %v2377_v43 = vpop.f32.mrb[46].mxu1  ;;  %v1441_v41 = vadd.f32 1.0, %v2745_v30 }
 0x32c   :  { %v2749_v40 = vpop.eup %2748  ;;  %2019 = vst [vmem:[#allocation13 + $0x28] sm:$0xff] %v2003_v27  ;;  %2760 = vtanh.f32 %v1980_v13  ;;  %v1981_v16 = vadd.f32 %v2377_v43, %v3828_v49  ;;  %v1947_v9 = vpop.f32.mrb[47].mxu1 }
 0x32d   :  { %v2751_v12 = vpop.eup %2750  ;;  %2762 = vtanh.f32 %v1978_v3  ;;  %v1979_v56 = vadd.f32 %v3828_v49, %v1947_v9  ;;  %v1443_v28 = vadd.f32 1.0, %v2749_v40  ;;  %v1442_v49 = vadd.f32 1.0, %v2747_v48 }
 0x32e   :  { %v2753_v36 = vpop.eup %2752  ;;  %2764 = vtanh.f32 %v1981_v16  ;;  %v1444_v33 = vadd.f32 1.0, %v2751_v12  ;;  %v1457_v31 = vmul.f32 0.5, %v1441_v41 }
 0x32f   :  { %v2755_v52 = vpop.eup %2754  ;;  %v2008_v6 = vmul.f32 %v2753_v36, %v1455_v46  ;;  %2766 = vtanh.f32 %v1979_v56  ;;  %v1459_v14 = vmul.f32 0.5, %v1443_v28  ;;  %v1458_v32 = vmul.f32 0.5, %v1442_v49 }
 0x330   :  { %v2757_v10 = vpop.eup %2756  ;;  %v2006_v51 = vmul.f32 %v2755_v52, %v1453_v8  ;;  %v1460_v29 = vmul.f32 0.5, %v1444_v33 }
 0x331   :  { %v2759_v19 = vpop.eup %2758  ;;  %2024 = vst [vmem:[#allocation13 + $0x50] sm:$0xff] %v2008_v6  ;;  %v2009_v42 = vmul.f32 %v2757_v10, %v1456_v61 }
 0x332   :  { %2022 = vst [vmem:[#allocation13 + $0x40] sm:$0xff] %v2006_v51  ;;  %v2007_v11 = vmul.f32 %v2759_v19, %v1454_v58 }
 0x333   :  { %2025 = vst [vmem:[#allocation13 + $0x58] sm:$0xff] %v2009_v42 }
 0x334   :  { %2023 = vst [vmem:[#allocation13 + $0x48] sm:$0xff] %v2007_v11 }
 0x336   :  { %v2761_v4 = vpop.eup %2760 }
 0x337   :  { %v2763_v39 = vpop.eup %2762  ;;  %v2012_v24 = vmul.f32 %v2761_v4, %v1459_v14 }
 0x338   :  { %v2765_v21 = vpop.eup %2764  ;;  %v2010_v50 = vmul.f32 %v2763_v39, %v1457_v31 }
 0x339   :  { %v2767_v54 = vpop.eup %2766  ;;  %2028 = vst [vmem:[#allocation13 + $0x70] sm:$0xff] %v2012_v24  ;;  %v2013_v44 = vmul.f32 %v2765_v21, %v1460_v29 }
 0x33a   :  { %2026 = vst [vmem:[#allocation13 + $0x60] sm:$0xff] %v2010_v50  ;;  %v2011_v57 = vmul.f32 %v2767_v54, %v1458_v32 }
 0x33b   :  { %2029 = vst [vmem:[#allocation13 + $0x78] sm:$0xff] %v2013_v44 }
 0x33c   :  { %2027 = vst [vmem:[#allocation13 + $0x68] sm:$0xff] %v2011_v57 }
 0x33d   :  { %2956 = shalt.err (!%p2953_p12)
}
 0x33e   :  { %s2957_s3 = scalar_lea.hbm %s3887_s10, 2048 }
 0x33f   :  { %p2958_p13 = scmp.ne.s32.totalorder %s3887_s10, %s2957_s3  ;;  %p2961_p0 = scmp.lt.u32.totalorder %s2957_s3, %s3887_s10 }
 0x341   :  { %p2963_p1 = pnand %p2961_p0, %p2958_p13 }
 0x343   :  { %2966 = shalt.err (!%p2963_p1)
}
 0x344   :  { %2073 = dma.vmem_to_hbm [thread:$0]  %s2068_s7, 2048, %s3887_s10, [#allocation4], %s2980_s13, %s2980_s13, %s2981_s14  }
 0x345   :  { %2975 = dma.done.wait [#allocation4], 2048  }
 0x346   :  { %2976 = vsyncadd [#allocation4], 4294965248 }
 0x347   :  { %2977 = dma.done.wait [#allocation15], 4096  }
 0x348   :  { %2978 = vsyncadd [#allocation15], 4294963200 }
 0x349   :  { %2107 = vsyncpa [#allocation3], 1 }
 0x34a   :  { %2108 = vsyncpa [#allocation6], 1 }
 0x34b   :  { %2109 = vsyncpa [#allocation9], 1 }
 0x34c   :  { %2110 = vsyncpa [#allocation12], 1 }
 0x34d   :  { %2111 = vsyncpa [#allocation4], 1 }
 0x34e   :  { %2112 = vsyncpa [#allocation15], 1 }

</bundles_post_ra>
